<compile_context>
chip_gen: v6e
topology: v6e:2x2x1
jax: 0.10.0
libtpu: 0.0.40
codegen_flags: <defaults>
</compile_context>

<pallas_src>
import functools

import jax
import jax.numpy as jnp
from jax import lax
from jax.experimental import pallas as pl
from jax.experimental.pallas import tpu as pltpu


def get_padding(kernel_size, dilation=1):
    return (kernel_size * dilation - dilation) // 2


def _round_up(x, m):
    return ((x + m - 1) // m) * m


@functools.lru_cache(maxsize=None)
def _vmem_limit_bytes():
    """Generation-aware VMEM budget: ~48 MiB on v7x (64 MiB physical),
    ~100 MiB on v5e/v6e (128 MiB physical)."""
    try:
        cap = int(pltpu.get_tpu_info().vmem_capacity_bytes)
    except Exception:                       # defensive: query may be unavailable
        cap = 64 * 1024 * 1024
    return int(max(32 * 1024 * 1024,
                   min(cap - 16 * 1024 * 1024, 100 * 1024 * 1024)))


def _pick_m_tile(h_out, c2_in, cout_p):
    """Output-row tile: keep bf16 in/out blocks + the f32 accumulator to a
    couple of MiB so the acc RMW traffic is bounded and many pipeline steps
    exist to hide DMA, independent of sequence length."""
    budget = 2 * 1024 * 1024
    per_row = 2 * max(c2_in, cout_p) + 4 * cout_p
    mt = max(64, min(2048, budget // per_row))
    mt = min(mt, h_out)
    return _round_up(max(mt, 1), 8)


# ----------------------------------------------------------------------------
# Pallas kernel: one (row r, output-row tile t) block of the (K,1)/(stride,1)
# replicate-padded conv  ->  bias  ->  LeakyReLU(0.1)
# ----------------------------------------------------------------------------
def _conv_kx1_kernel(*refs, K, stride, act, has_halo):
    """x_ref : (Mt, stride*Cin) bf16 -- phase-interleaved input rows:
                 x_ref[m, p*Cin + c] == xp[(t*Mt + m)*stride + p, c]
       h_ref : (8, stride*Cin)  bf16 -- next 8 phase rows (halo), present only
                 when (K-1)//stride > 0
       w_ref : (K, Cin, Cout)   bf16 -- per-tap weight matrices (zero padded)
       b_ref : (1, Cout)        f32
       o_ref : (Mt, Cout)       bf16 -- Cout multiple of 128 => lane-dense store
    """
    if has_halo:
        x_ref, h_ref, w_ref, b_ref, o_ref = refs
    else:
        x_ref, w_ref, b_ref, o_ref = refs
        h_ref = None
    mt, cout = o_ref.shape
    cin = w_ref.shape[1]
    acc = jnp.zeros((mt, cout), jnp.float32)
    for kh in range(K):                          # static unroll, K in {1, 3, 5}
        q, p = divmod(kh, stride)
        lo = p * cin
        if q == 0:
            tap = x_ref[:, lo:lo + cin]          # stream straight from the ref
        else:                                    # last q rows come from the halo
            tap = jnp.concatenate(
                [x_ref[q:, lo:lo + cin], h_ref[:q, lo:lo + cin]], axis=0)
        acc = acc + jnp.dot(tap, w_ref[kh], preferred_element_type=jnp.float32)
    acc = acc + b_ref[...]
    if act:
        acc = jnp.maximum(acc, 0.1 * acc)        # LeakyReLU(0.1): mul + max
    o_ref[...] = acc.astype(o_ref.dtype)


def _conv_layer(x, w3, b2, *, K, stride, pad, act):
    """x: (R, H, Cin_p) bf16 channels-last.  Returns (R, Hout, Cout_p) bf16."""
    R, H, Cp = x.shape
    Cout_p = w3.shape[-1]
    Hp = H + 2 * pad
    Hout = (Hp - K) // stride + 1
    halo = 8 if (K - 1) // stride > 0 else 0     # halo rounded up to 8 sublanes

    C2 = stride * Cp
    Mt = _pick_m_tile(Hout, C2, Cout_p)
    NT = -(-Hout // Mt)

    # Replicate pad, plus enough tail rows so every (main + halo) block is in
    # bounds; tail rows only feed output rows >= Hout, which are dropped.
    rows_needed = (NT * Mt + halo) * stride
    pad_after = rows_needed - H - pad
    assert pad_after >= 0
    xp = jnp.pad(x, ((0, 0), (pad, pad_after), (0, 0)), mode="edge")
    # Free reshape: fold the stride into the lane axis so every tap is a
    # static contiguous slice (no strided / gathered loads in the kernel).
    xph = xp.reshape(R, rows_needed // stride, C2)

    kernel = functools.partial(_conv_kx1_kernel, K=K, stride=stride, act=act,
                               has_halo=bool(halo))
    in_specs = [pl.BlockSpec((None, Mt, C2), lambda r, t: (r, t, 0))]
    operands = [xph]
    if halo:
        mtb = Mt // 8
        in_specs.append(                          # 8-row halo view, same array
            pl.BlockSpec((None, 8, C2), lambda r, t: (r, (t + 1) * mtb, 0)))
        operands.append(xph)
    in_specs += [
        pl.BlockSpec((K, Cp, Cout_p), lambda r, t: (0, 0, 0)),   # resident
        pl.BlockSpec((1, Cout_p), lambda r, t: (0, 0)),          # resident
    ]
    # TODO(synk): pipeline_mode=pl.Buffered(1) on the resident weight/bias
    # specs would halve the weight VMEM on the 1024-channel layers.
    return pl.pallas_call(
        kernel,
        out_shape=jax.ShapeDtypeStruct((R, Hout, Cout_p), jnp.bfloat16),
        grid_spec=pltpu.PrefetchScalarGridSpec(
            num_scalar_prefetch=0,
            grid=(R, NT),
            in_specs=in_specs,
            out_specs=pl.BlockSpec((None, Mt, Cout_p), lambda r, t: (r, t, 0)),
        ),
        compiler_params=pltpu.CompilerParams(
            dimension_semantics=("parallel", "parallel"),
            vmem_limit_bytes=_vmem_limit_bytes(),
        ),
    )(*operands, w3, b2)


# ----------------------------------------------------------------------------
# DiscriminatorP
# ----------------------------------------------------------------------------
class DiscriminatorPPallas:
    def __init__(self, period, kernel_size=5, stride=3, channels=32,
                 channels_mul=4, num_layers=4, max_channels=1024, key=None):
        # TODO(synk): weight_norm / spectral_norm parametrization is an
        # identity at init time; synthetic weights are used directly.
        self.period = period
        self.kernel_size = kernel_size
        self.stride = stride
        key = jax.random.PRNGKey(0) if key is None else key

        shapes = [(channels, 1, kernel_size, 1)]
        c = channels
        for _ in range(num_layers):
            c_next = min(c * channels_mul, max_channels)
            shapes.append((c_next, c, kernel_size, 1))
            c = c_next
        post_shape = (1, c, 3, 1)

        def make_param(k, shp):
            k1, k2 = jax.random.split(k)
            fan_in = shp[1] * shp[2] * shp[3]
            w = jax.random.normal(k1, shp, jnp.float32) / jnp.sqrt(float(fan_in))
            b = 0.01 * jax.random.normal(k2, (shp[0],), jnp.float32)
            return w, b

        self.conv_params = []
        for shp in shapes:
            key, sub = jax.random.split(key)
            self.conv_params.append(make_param(sub, shp))
        key, sub = jax.random.split(key)
        self.post_params = make_param(sub, post_shape)

        # --- packed bf16 weights for the Pallas path --------------------------
        # Layer 1 (Cin=1) is collapsed into a single matmul over the K taps
        # (host-side im2col of the 1-channel signal, K padded to 8).  Later
        # layers chain channels-last with Cout padded to x128 (lane-dense
        # stores, >=128-deep contractions).
        # TODO(synk): pack 4 H rows x channels into the 128-lane layer-1 output
        # to remove the 32->128 zero-lane waste in layer 2's contraction.
        self._k0_p = _round_up(kernel_size, 8)
        w0, b0 = self.conv_params[0]
        cout0_p = _round_up(w0.shape[0], 128)
        self._packed_first = self._pack_first(w0, b0, self._k0_p, cout0_p)
        self._packed = []
        cin_p = cout0_p
        for (w, b) in self.conv_params[1:]:
            cout_p = _round_up(w.shape[0], 128)
            self._packed.append(self._pack(w, b, cin_p, cout_p))
            cin_p = cout_p
        w, b = self.post_params
        self._post_packed = self._pack(w, b, cin_p, _round_up(w.shape[0], 128))

        self._fwd = jax.jit(self._forward)

    @staticmethod
    def _pack(w, b, cin_p, cout_p):
        cout, cin, _, _ = w.shape
        w3 = jnp.transpose(w[:, :, :, 0], (2, 1, 0))            # (K, Cin, Cout)
        w3 = jnp.pad(w3, ((0, 0), (0, cin_p - cin), (0, cout_p - cout)))
        b2 = jnp.pad(b, (0, cout_p - cout)).reshape(1, cout_p)
        return w3.astype(jnp.bfloat16), b2.astype(jnp.float32), cout

    @staticmethod
    def _pack_first(w, b, k_p, cout_p):
        cout, _, K, _ = w.shape
        w2 = jnp.transpose(w[:, 0, :, 0], (1, 0))               # (K, Cout)
        w3 = jnp.pad(w2, ((0, k_p - K), (0, cout_p - cout)))[None]  # (1,K_p,Coutp)
        b2 = jnp.pad(b, (0, cout_p - cout)).reshape(1, cout_p)
        return w3.astype(jnp.bfloat16), b2.astype(jnp.float32), cout

    def _prep(self, x):
        b, c, t = x.shape
        if t % self.period != 0:
            n_pad = self.period - t % self.period
            if n_pad >= t:                    # reflect pad precondition
                raise ValueError("reflect pad requires n_pad < t")
            x = jnp.pad(x, ((0, 0), (0, 0), (0, n_pad)), mode="reflect")
            t = t + n_pad
        return x.reshape(b, c, t // self.period, self.period)

    def _forward(self, x):
        x4 = self._prep(x)                                  # (B, 1, H, W) NCHW
        B, _, H, W = x4.shape
        K, s = self.kernel_size, self.stride
        pad = get_padding(self.kernel_size, 1)

        # one row per (batch, period-column): (B*W, H) single-channel signal
        xc = jnp.transpose(x4[:, 0], (0, 2, 1)).reshape(B * W, H)

        # ---- layer 1 (Cin=1): cheap host-side im2col of the 1-channel signal
        #      so the K taps collapse into one MXU matmul per tile.
        xp0 = jnp.pad(xc, ((0, 0), (pad, pad)), mode="edge")
        h_out1 = (H + 2 * pad - K) // s + 1
        taps = [xp0[:, kh::s][:, :h_out1] for kh in range(K)]
        lhs = jnp.stack(taps, axis=-1)                      # (R, Hout1, K)
        lhs = jnp.pad(lhs, ((0, 0), (0, 0), (0, self._k0_p - K)))
        lhs = lhs.astype(jnp.bfloat16)

        feats, couts = [], []
        w3, b2, cout = self._packed_first
        a = _conv_layer(lhs, w3, b2, K=1, stride=1, pad=0, act=True)
        feats.append(a); couts.append(cout)
        for (w3, b2, cout) in self._packed:
            a = _conv_layer(a, w3, b2, K=K, stride=s, pad=pad, act=True)
            feats.append(a); couts.append(cout)
        w3, b2, cout = self._post_packed
        a = _conv_layer(a, w3, b2, K=3, stride=1, pad=1, act=False)
        feats.append(a); couts.append(cout)
        # TODO(synk): fuse the small late layers (3..post) into one pallas_call
        # so their activations never round-trip through HBM (v5e win).

        # fmap in the module's NCHW layout; kept bf16 (no f32 upcast) and
        # sliced to the real channel count BEFORE the transpose to halve the
        # epilogue HBM traffic.  TODO(synk): expose the channels-last bf16
        # activations directly if the downstream loss allows it.
        fmap = []
        for feat, co in zip(feats, couts):
            hf = feat.shape[1]
            f = feat[:, :, :co].reshape(B, W, hf, co)
            fmap.append(jnp.transpose(f, (0, 3, 2, 1)))     # (B, C, H', W)
        return fmap[-1], fmap

    def __call__(self, x):
        return self._fwd(x)

    # pure-JAX reference (lax.conv) applying the same bf16 quantization points
    # as the Pallas path, for correctness validation.
    def reference(self, x):
        def ref_conv(xb, w, b, stride, pad, act):
            xp = jnp.pad(xb, ((0, 0), (0, 0), (pad, pad), (0, 0)), mode="edge")
            y = lax.conv_general_dilated(
                xp, w.astype(jnp.bfloat16), window_strides=(stride, 1),
                padding="VALID", dimension_numbers=("NCHW", "OIHW", "NCHW"),
                preferred_element_type=jnp.float32)
            y = y + b.reshape(1, -1, 1, 1)
            if act:
                y = jnp.maximum(y, 0.1 * y)
            return y.astype(jnp.bfloat16)        # Pallas path stores bf16

        xb = self._prep(x).astype(jnp.bfloat16)
        fmap = []
        pad = get_padding(self.kernel_size, 1)
        for w, b in self.conv_params:
            xb = ref_conv(xb, w, b, self.stride, pad, act=True)
            fmap.append(xb.astype(jnp.float32))
        w, b = self.post_params
        xb = ref_conv(xb, w, b, 1, 1, act=False)
        fmap.append(xb.astype(jnp.float32))
        return fmap[-1], fmap


if __name__ == "__main__":
    key = jax.random.PRNGKey(0)
    kx, kp = jax.random.split(key)

    # small config consistent with the module (true defaults: channels=32,
    # channels_mul=4, num_layers=4, max_channels=1024) kept small for the test.
    disc = DiscriminatorPPallas(period=4, kernel_size=5, stride=3,
                                channels=16, channels_mul=4, num_layers=2,
                                max_channels=128, key=kp)
    # (batch=2, channels=1, t=399); 399 % 4 != 0 exercises the reflect-pad path.
    x = jax.random.normal(kx, (2, 1, 399), jnp.float32)

    out, fmap = disc(x)
    out = jax.block_until_ready(out)

    ref_out, ref_fmap = disc.reference(x)
    # Both paths store bf16 between layers; f32 accumulation-order differences
    # can flip a bf16 ulp (~0.8% rel) on isolated elements, hence 2e-2.
    assert out.shape == ref_out.shape
    assert jnp.allclose(out, ref_out, atol=2e-2, rtol=2e-2)
    assert len(fmap) == len(ref_fmap)
    for a, b in zip(fmap, ref_fmap):
        assert a.shape == b.shape
        assert jnp.allclose(a, b, atol=2e-2, rtol=2e-2)

    print("KERNEL_OK")
</pallas_src>

<mosaic_0001>
module attributes {stable_mosaic.version = 11 : i64} {
  func.func @_conv_kx1_kernel(%arg0: i32, %arg1: i32, %arg2: memref<1x40x8xbf16, #tpu.memory_space<vmem>>, %arg3: memref<1x8x128xbf16, #tpu.memory_space<vmem>>, %arg4: memref<1x128xf32, #tpu.memory_space<vmem>>, %arg5: memref<1x40x128xbf16, #tpu.memory_space<vmem>>) attributes {dimension_semantics = [#tpu.dimension_semantics<parallel>, #tpu.dimension_semantics<parallel>], iteration_bounds = array<i64: 8, 1>, scalar_prefetch = 0 : i64, scratch_operands = 0 : i64, tpu.core_type = #tpu.core_type<tc>, window_params = [{transform_indices = @transform_0, window_bounds = array<i64: 1, 40, 8>}, {pipeline_mode = #tpu.pipeline_mode<synchronous>, transform_indices = @transform_1, window_bounds = array<i64: 1, 8, 128>}, {pipeline_mode = #tpu.pipeline_mode<synchronous>, transform_indices = @transform_2, window_bounds = array<i64: 1, 128>}, {transform_indices = @transform_3, window_bounds = array<i64: 1, 40, 128>}]} {
    %cst = arith.constant 0.000000e+00 : f32
    %0 = vector.broadcast %cst : f32 to vector<40x128xf32>
    %c0 = arith.constant 0 : index
    %c0_0 = arith.constant 0 : index
    %c0_1 = arith.constant 0 : index
    %1 = vector.load %arg2[%c0, %c0_0, %c0_1] : memref<1x40x8xbf16, #tpu.memory_space<vmem>>, vector<1x40x8xbf16>
    %2 = vector.shape_cast %1 : vector<1x40x8xbf16> to vector<40x8xbf16>
    %c0_2 = arith.constant 0 : index
    %c0_3 = arith.constant 0 : index
    %c0_4 = arith.constant 0 : index
    %3 = vector.load %arg3[%c0_2, %c0_3, %c0_4] : memref<1x8x128xbf16, #tpu.memory_space<vmem>>, vector<1x8x128xbf16>
    %4 = vector.shape_cast %3 : vector<1x8x128xbf16> to vector<8x128xbf16>
    %cst_5 = arith.constant dense<0.000000e+00> : vector<40x128xf32>
    %5 = tpu.matmul %2, %4, %cst_5 {dimension_numbers = #tpu.dot_dimension_numbers<[1], [0], [0], [1], [0, 0, 1, 1], [], []>} : vector<40x8xbf16>, vector<8x128xbf16>, vector<40x128xf32> -> vector<40x128xf32>
    %6 = arith.addf %0, %5 : vector<40x128xf32>
    %c0_6 = arith.constant 0 : index
    %c0_7 = arith.constant 0 : index
    %7 = vector.load %arg4[%c0_6, %c0_7] : memref<1x128xf32, #tpu.memory_space<vmem>>, vector<1x128xf32>
    %8 = vector.broadcast %7 : vector<1x128xf32> to vector<40x128xf32>
    %9 = arith.addf %6, %8 : vector<40x128xf32>
    %cst_8 = arith.constant 1.000000e-01 : f32
    %10 = vector.broadcast %cst_8 : f32 to vector<40x128xf32>
    %11 = arith.mulf %10, %9 : vector<40x128xf32>
    %12 = arith.maximumf %9, %11 : vector<40x128xf32>
    %13 = arith.truncf %12 : vector<40x128xf32> to vector<40x128xbf16>
    %c0_9 = arith.constant 0 : index
    %c0_10 = arith.constant 0 : index
    %c0_11 = arith.constant 0 : index
    %14 = vector.load %arg5[%c0_9, %c0_10, %c0_11] : memref<1x40x128xbf16, #tpu.memory_space<vmem>>, vector<1x40x128xbf16>
    %15 = vector.shape_cast %14 : vector<1x40x128xbf16> to vector<40x128xbf16>
    %16 = vector.shape_cast %13 : vector<40x128xbf16> to vector<1x40x128xbf16>
    tpu.vector_store %arg5[%c0_9, %c0_10, %c0_11], %16 {strides = array<i32>} : memref<1x40x128xbf16, #tpu.memory_space<vmem>>, vector<1x40x128xbf16>,
    return
  }
  func.func @transform_0(%arg0: i32, %arg1: i32) -> (i32, i32, i32) {
    %c0_i32 = arith.constant 0 : i32
    %c0_i32_0 = arith.constant 0 : i32
    return %arg0, %arg1, %c0_i32 : i32, i32, i32
  }
  func.func @transform_1(%arg0: i32, %arg1: i32) -> (i32, i32, i32) {
    %c0_i32 = arith.constant 0 : i32
    %c0_i32_0 = arith.constant 0 : i32
    %c0_i32_1 = arith.constant 0 : i32
    %c0_i32_2 = arith.constant 0 : i32
    return %c0_i32, %c0_i32_0, %c0_i32_1 : i32, i32, i32
  }
  func.func @transform_2(%arg0: i32, %arg1: i32) -> (i32, i32) {
    %c0_i32 = arith.constant 0 : i32
    %c0_i32_0 = arith.constant 0 : i32
    %c0_i32_1 = arith.constant 0 : i32
    return %c0_i32, %c0_i32_0 : i32, i32
  }
  func.func @transform_3(%arg0: i32, %arg1: i32) -> (i32, i32, i32) {
    %c0_i32 = arith.constant 0 : i32
    %c0_i32_0 = arith.constant 0 : i32
    return %arg0, %arg1, %c0_i32 : i32, i32, i32
  }
}

module attributes {stable_mosaic.version = 11 : i64} {
  func.func @_conv_kx1_kernel(%arg0: i32, %arg1: i32, %arg2: memref<1x16x384xbf16, #tpu.memory_space<vmem>>, %arg3: memref<1x8x384xbf16, #tpu.memory_space<vmem>>, %arg4: memref<5x128x128xbf16, #tpu.memory_space<vmem>>, %arg5: memref<1x128xf32, #tpu.memory_space<vmem>>, %arg6: memref<1x16x128xbf16, #tpu.memory_space<vmem>>) attributes {dimension_semantics = [#tpu.dimension_semantics<parallel>, #tpu.dimension_semantics<parallel>], iteration_bounds = array<i64: 8, 1>, scalar_prefetch = 0 : i64, scratch_operands = 0 : i64, tpu.core_type = #tpu.core_type<tc>, window_params = [{transform_indices = @transform_0, window_bounds = array<i64: 1, 16, 384>}, {transform_indices = @transform_1, window_bounds = array<i64: 1, 8, 384>}, {pipeline_mode = #tpu.pipeline_mode<synchronous>, transform_indices = @transform_2, window_bounds = array<i64: 5, 128, 128>}, {pipeline_mode = #tpu.pipeline_mode<synchronous>, transform_indices = @transform_3, window_bounds = array<i64: 1, 128>}, {transform_indices = @transform_4, window_bounds = array<i64: 1, 16, 128>}]} {
    %cst = arith.constant 0.000000e+00 : f32
    %0 = vector.broadcast %cst : f32 to vector<16x128xf32>
    %c0 = arith.constant 0 : index
    %c0_0 = arith.constant 0 : index
    %c0_1 = arith.constant 0 : index
    %1 = vector.load %arg2[%c0, %c0_0, %c0_1] : memref<1x16x384xbf16, #tpu.memory_space<vmem>>, vector<1x16x128xbf16>
    %2 = vector.shape_cast %1 : vector<1x16x128xbf16> to vector<16x128xbf16>
    %c0_2 = arith.constant 0 : index
    %c0_3 = arith.constant 0 : index
    %c0_4 = arith.constant 0 : index
    %3 = vector.load %arg4[%c0_2, %c0_3, %c0_4] : memref<5x128x128xbf16, #tpu.memory_space<vmem>>, vector<1x128x128xbf16>
    %4 = vector.shape_cast %3 : vector<1x128x128xbf16> to vector<128x128xbf16>
    %cst_5 = arith.constant dense<0.000000e+00> : vector<16x128xf32>
    %5 = tpu.matmul %2, %4, %cst_5 {dimension_numbers = #tpu.dot_dimension_numbers<[1], [0], [0], [1], [0, 0, 1, 1], [], []>} : vector<16x128xbf16>, vector<128x128xbf16>, vector<16x128xf32> -> vector<16x128xf32>
    %6 = arith.addf %0, %5 : vector<16x128xf32>
    %c0_6 = arith.constant 0 : index
    %c0_7 = arith.constant 0 : index
    %c128 = arith.constant 128 : index
    %7 = vector.load %arg2[%c0_6, %c0_7, %c128] : memref<1x16x384xbf16, #tpu.memory_space<vmem>>, vector<1x16x128xbf16>
    %8 = vector.shape_cast %7 : vector<1x16x128xbf16> to vector<16x128xbf16>
    %c1 = arith.constant 1 : index
    %c0_8 = arith.constant 0 : index
    %c0_9 = arith.constant 0 : index
    %9 = vector.load %arg4[%c1, %c0_8, %c0_9] : memref<5x128x128xbf16, #tpu.memory_space<vmem>>, vector<1x128x128xbf16>
    %10 = vector.shape_cast %9 : vector<1x128x128xbf16> to vector<128x128xbf16>
    %cst_10 = arith.constant dense<0.000000e+00> : vector<16x128xf32>
    %11 = tpu.matmul %8, %10, %cst_10 {dimension_numbers = #tpu.dot_dimension_numbers<[1], [0], [0], [1], [0, 0, 1, 1], [], []>} : vector<16x128xbf16>, vector<128x128xbf16>, vector<16x128xf32> -> vector<16x128xf32>
    %12 = arith.addf %6, %11 : vector<16x128xf32>
    %c0_11 = arith.constant 0 : index
    %c0_12 = arith.constant 0 : index
    %c256 = arith.constant 256 : index
    %13 = vector.load %arg2[%c0_11, %c0_12, %c256] : memref<1x16x384xbf16, #tpu.memory_space<vmem>>, vector<1x16x128xbf16>
    %14 = vector.shape_cast %13 : vector<1x16x128xbf16> to vector<16x128xbf16>
    %c2 = arith.constant 2 : index
    %c0_13 = arith.constant 0 : index
    %c0_14 = arith.constant 0 : index
    %15 = vector.load %arg4[%c2, %c0_13, %c0_14] : memref<5x128x128xbf16, #tpu.memory_space<vmem>>, vector<1x128x128xbf16>
    %16 = vector.shape_cast %15 : vector<1x128x128xbf16> to vector<128x128xbf16>
    %cst_15 = arith.constant dense<0.000000e+00> : vector<16x128xf32>
    %17 = tpu.matmul %14, %16, %cst_15 {dimension_numbers = #tpu.dot_dimension_numbers<[1], [0], [0], [1], [0, 0, 1, 1], [], []>} : vector<16x128xbf16>, vector<128x128xbf16>, vector<16x128xf32> -> vector<16x128xf32>
    %18 = arith.addf %12, %17 : vector<16x128xf32>
    %c0_16 = arith.constant 0 : index
    %c1_17 = arith.constant 1 : index
    %c0_18 = arith.constant 0 : index
    %19 = vector.load %arg2[%c0_16, %c1_17, %c0_18] : memref<1x16x384xbf16, #tpu.memory_space<vmem>>, vector<1x15x128xbf16>
    %20 = vector.shape_cast %19 : vector<1x15x128xbf16> to vector<15x128xbf16>
    %c0_19 = arith.constant 0 : index
    %c0_20 = arith.constant 0 : index
    %c0_21 = arith.constant 0 : index
    %21 = vector.load %arg3[%c0_19, %c0_20, %c0_21] : memref<1x8x384xbf16, #tpu.memory_space<vmem>>, vector<1x1x128xbf16>
    %22 = vector.shape_cast %21 : vector<1x1x128xbf16> to vector<1x128xbf16>
    %23 = tpu.concatenate %20, %22 in 0 : vector<15x128xbf16>, vector<1x128xbf16> -> vector<16x128xbf16>
    %c3 = arith.constant 3 : index
    %c0_22 = arith.constant 0 : index
    %c0_23 = arith.constant 0 : index
    %24 = vector.load %arg4[%c3, %c0_22, %c0_23] : memref<5x128x128xbf16, #tpu.memory_space<vmem>>, vector<1x128x128xbf16>
    %25 = vector.shape_cast %24 : vector<1x128x128xbf16> to vector<128x128xbf16>
    %cst_24 = arith.constant dense<0.000000e+00> : vector<16x128xf32>
    %26 = tpu.matmul %23, %25, %cst_24 {dimension_numbers = #tpu.dot_dimension_numbers<[1], [0], [0], [1], [0, 0, 1, 1], [], []>} : vector<16x128xbf16>, vector<128x128xbf16>, vector<16x128xf32> -> vector<16x128xf32>
    %27 = arith.addf %18, %26 : vector<16x128xf32>
    %c0_25 = arith.constant 0 : index
    %c1_26 = arith.constant 1 : index
    %c128_27 = arith.constant 128 : index
    %28 = vector.load %arg2[%c0_25, %c1_26, %c128_27] : memref<1x16x384xbf16, #tpu.memory_space<vmem>>, vector<1x15x128xbf16>
    %29 = vector.shape_cast %28 : vector<1x15x128xbf16> to vector<15x128xbf16>
    %c0_28 = arith.constant 0 : index
    %c0_29 = arith.constant 0 : index
    %c128_30 = arith.constant 128 : index
    %30 = vector.load %arg3[%c0_28, %c0_29, %c128_30] : memref<1x8x384xbf16, #tpu.memory_space<vmem>>, vector<1x1x128xbf16>
    %31 = vector.shape_cast %30 : vector<1x1x128xbf16> to vector<1x128xbf16>
    %32 = tpu.concatenate %29, %31 in 0 : vector<15x128xbf16>, vector<1x128xbf16> -> vector<16x128xbf16>
    %c4 = arith.constant 4 : index
    %c0_31 = arith.constant 0 : index
    %c0_32 = arith.constant 0 : index
    %33 = vector.load %arg4[%c4, %c0_31, %c0_32] : memref<5x128x128xbf16, #tpu.memory_space<vmem>>, vector<1x128x128xbf16>
    %34 = vector.shape_cast %33 : vector<1x128x128xbf16> to vector<128x128xbf16>
    %cst_33 = arith.constant dense<0.000000e+00> : vector<16x128xf32>
    %35 = tpu.matmul %32, %34, %cst_33 {dimension_numbers = #tpu.dot_dimension_numbers<[1], [0], [0], [1], [0, 0, 1, 1], [], []>} : vector<16x128xbf16>, vector<128x128xbf16>, vector<16x128xf32> -> vector<16x128xf32>
    %36 = arith.addf %27, %35 : vector<16x128xf32>
    %c0_34 = arith.constant 0 : index
    %c0_35 = arith.constant 0 : index
    %37 = vector.load %arg5[%c0_34, %c0_35] : memref<1x128xf32, #tpu.memory_space<vmem>>, vector<1x128xf32>
    %38 = vector.broadcast %37 : vector<1x128xf32> to vector<16x128xf32>
    %39 = arith.addf %36, %38 : vector<16x128xf32>
    %cst_36 = arith.constant 1.000000e-01 : f32
    %40 = vector.broadcast %cst_36 : f32 to vector<16x128xf32>
    %41 = arith.mulf %40, %39 : vector<16x128xf32>
    %42 = arith.maximumf %39, %41 : vector<16x128xf32>
    %43 = arith.truncf %42 : vector<16x128xf32> to vector<16x128xbf16>
    %c0_37 = arith.constant 0 : index
    %c0_38 = arith.constant 0 : index
    %c0_39 = arith.constant 0 : index
    %44 = vector.load %arg6[%c0_37, %c0_38, %c0_39] : memref<1x16x128xbf16, #tpu.memory_space<vmem>>, vector<1x16x128xbf16>
    %45 = vector.shape_cast %44 : vector<1x16x128xbf16> to vector<16x128xbf16>
    %46 = vector.shape_cast %43 : vector<16x128xbf16> to vector<1x16x128xbf16>
    tpu.vector_store %arg6[%c0_37, %c0_38, %c0_39], %46 {strides = array<i32>} : memref<1x16x128xbf16, #tpu.memory_space<vmem>>, vector<1x16x128xbf16>,
    return
  }
  func.func @transform_0(%arg0: i32, %arg1: i32) -> (i32, i32, i32) {
    %c0_i32 = arith.constant 0 : i32
    %c0_i32_0 = arith.constant 0 : i32
    return %arg0, %arg1, %c0_i32 : i32, i32, i32
  }
  func.func @transform_1(%arg0: i32, %arg1: i32) -> (i32, i32, i32) {
    %c1_i32 = arith.constant 1 : i32
    %0 = arith.addi %arg1, %c1_i32 : i32
    %c2_i32 = arith.constant 2 : i32
    %1 = arith.muli %0, %c2_i32 : i32
    %c0_i32 = arith.constant 0 : i32
    %c0_i32_0 = arith.constant 0 : i32
    return %arg0, %1, %c0_i32 : i32, i32, i32
  }
  func.func @transform_2(%arg0: i32, %arg1: i32) -> (i32, i32, i32) {
    %c0_i32 = arith.constant 0 : i32
    %c0_i32_0 = arith.constant 0 : i32
    %c0_i32_1 = arith.constant 0 : i32
    %c0_i32_2 = arith.constant 0 : i32
    return %c0_i32, %c0_i32_0, %c0_i32_1 : i32, i32, i32
  }
  func.func @transform_3(%arg0: i32, %arg1: i32) -> (i32, i32) {
    %c0_i32 = arith.constant 0 : i32
    %c0_i32_0 = arith.constant 0 : i32
    %c0_i32_1 = arith.constant 0 : i32
    return %c0_i32, %c0_i32_0 : i32, i32
  }
  func.func @transform_4(%arg0: i32, %arg1: i32) -> (i32, i32, i32) {
    %c0_i32 = arith.constant 0 : i32
    %c0_i32_0 = arith.constant 0 : i32
    return %arg0, %arg1, %c0_i32 : i32, i32, i32
  }
}

module attributes {stable_mosaic.version = 11 : i64} {
  func.func @_conv_kx1_kernel(%arg0: i32, %arg1: i32, %arg2: memref<1x8x384xbf16, #tpu.memory_space<vmem>>, %arg3: memref<1x8x384xbf16, #tpu.memory_space<vmem>>, %arg4: memref<5x128x128xbf16, #tpu.memory_space<vmem>>, %arg5: memref<1x128xf32, #tpu.memory_space<vmem>>, %arg6: memref<1x8x128xbf16, #tpu.memory_space<vmem>>) attributes {dimension_semantics = [#tpu.dimension_semantics<parallel>, #tpu.dimension_semantics<parallel>], iteration_bounds = array<i64: 8, 1>, scalar_prefetch = 0 : i64, scratch_operands = 0 : i64, tpu.core_type = #tpu.core_type<tc>, window_params = [{transform_indices = @transform_0, window_bounds = array<i64: 1, 8, 384>}, {transform_indices = @transform_1, window_bounds = array<i64: 1, 8, 384>}, {pipeline_mode = #tpu.pipeline_mode<synchronous>, transform_indices = @transform_2, window_bounds = array<i64: 5, 128, 128>}, {pipeline_mode = #tpu.pipeline_mode<synchronous>, transform_indices = @transform_3, window_bounds = array<i64: 1, 128>}, {transform_indices = @transform_4, window_bounds = array<i64: 1, 8, 128>}]} {
    %cst = arith.constant 0.000000e+00 : f32
    %0 = vector.broadcast %cst : f32 to vector<8x128xf32>
    %c0 = arith.constant 0 : index
    %c0_0 = arith.constant 0 : index
    %c0_1 = arith.constant 0 : index
    %1 = vector.load %arg2[%c0, %c0_0, %c0_1] : memref<1x8x384xbf16, #tpu.memory_space<vmem>>, vector<1x8x128xbf16>
    %2 = vector.shape_cast %1 : vector<1x8x128xbf16> to vector<8x128xbf16>
    %c0_2 = arith.constant 0 : index
    %c0_3 = arith.constant 0 : index
    %c0_4 = arith.constant 0 : index
    %3 = vector.load %arg4[%c0_2, %c0_3, %c0_4] : memref<5x128x128xbf16, #tpu.memory_space<vmem>>, vector<1x128x128xbf16>
    %4 = vector.shape_cast %3 : vector<1x128x128xbf16> to vector<128x128xbf16>
    %cst_5 = arith.constant dense<0.000000e+00> : vector<8x128xf32>
    %5 = tpu.matmul %2, %4, %cst_5 {dimension_numbers = #tpu.dot_dimension_numbers<[1], [0], [0], [1], [0, 0, 1, 1], [], []>} : vector<8x128xbf16>, vector<128x128xbf16>, vector<8x128xf32> -> vector<8x128xf32>
    %6 = arith.addf %0, %5 : vector<8x128xf32>
    %c0_6 = arith.constant 0 : index
    %c0_7 = arith.constant 0 : index
    %c128 = arith.constant 128 : index
    %7 = vector.load %arg2[%c0_6, %c0_7, %c128] : memref<1x8x384xbf16, #tpu.memory_space<vmem>>, vector<1x8x128xbf16>
    %8 = vector.shape_cast %7 : vector<1x8x128xbf16> to vector<8x128xbf16>
    %c1 = arith.constant 1 : index
    %c0_8 = arith.constant 0 : index
    %c0_9 = arith.constant 0 : index
    %9 = vector.load %arg4[%c1, %c0_8, %c0_9] : memref<5x128x128xbf16, #tpu.memory_space<vmem>>, vector<1x128x128xbf16>
    %10 = vector.shape_cast %9 : vector<1x128x128xbf16> to vector<128x128xbf16>
    %cst_10 = arith.constant dense<0.000000e+00> : vector<8x128xf32>
    %11 = tpu.matmul %8, %10, %cst_10 {dimension_numbers = #tpu.dot_dimension_numbers<[1], [0], [0], [1], [0, 0, 1, 1], [], []>} : vector<8x128xbf16>, vector<128x128xbf16>, vector<8x128xf32> -> vector<8x128xf32>
    %12 = arith.addf %6, %11 : vector<8x128xf32>
    %c0_11 = arith.constant 0 : index
    %c0_12 = arith.constant 0 : index
    %c256 = arith.constant 256 : index
    %13 = vector.load %arg2[%c0_11, %c0_12, %c256] : memref<1x8x384xbf16, #tpu.memory_space<vmem>>, vector<1x8x128xbf16>
    %14 = vector.shape_cast %13 : vector<1x8x128xbf16> to vector<8x128xbf16>
    %c2 = arith.constant 2 : index
    %c0_13 = arith.constant 0 : index
    %c0_14 = arith.constant 0 : index
    %15 = vector.load %arg4[%c2, %c0_13, %c0_14] : memref<5x128x128xbf16, #tpu.memory_space<vmem>>, vector<1x128x128xbf16>
    %16 = vector.shape_cast %15 : vector<1x128x128xbf16> to vector<128x128xbf16>
    %cst_15 = arith.constant dense<0.000000e+00> : vector<8x128xf32>
    %17 = tpu.matmul %14, %16, %cst_15 {dimension_numbers = #tpu.dot_dimension_numbers<[1], [0], [0], [1], [0, 0, 1, 1], [], []>} : vector<8x128xbf16>, vector<128x128xbf16>, vector<8x128xf32> -> vector<8x128xf32>
    %18 = arith.addf %12, %17 : vector<8x128xf32>
    %c0_16 = arith.constant 0 : index
    %c1_17 = arith.constant 1 : index
    %c0_18 = arith.constant 0 : index
    %19 = vector.load %arg2[%c0_16, %c1_17, %c0_18] : memref<1x8x384xbf16, #tpu.memory_space<vmem>>, vector<1x7x128xbf16>
    %20 = vector.shape_cast %19 : vector<1x7x128xbf16> to vector<7x128xbf16>
    %c0_19 = arith.constant 0 : index
    %c0_20 = arith.constant 0 : index
    %c0_21 = arith.constant 0 : index
    %21 = vector.load %arg3[%c0_19, %c0_20, %c0_21] : memref<1x8x384xbf16, #tpu.memory_space<vmem>>, vector<1x1x128xbf16>
    %22 = vector.shape_cast %21 : vector<1x1x128xbf16> to vector<1x128xbf16>
    %23 = tpu.concatenate %20, %22 in 0 : vector<7x128xbf16>, vector<1x128xbf16> -> vector<8x128xbf16>
    %c3 = arith.constant 3 : index
    %c0_22 = arith.constant 0 : index
    %c0_23 = arith.constant 0 : index
    %24 = vector.load %arg4[%c3, %c0_22, %c0_23] : memref<5x128x128xbf16, #tpu.memory_space<vmem>>, vector<1x128x128xbf16>
    %25 = vector.shape_cast %24 : vector<1x128x128xbf16> to vector<128x128xbf16>
    %cst_24 = arith.constant dense<0.000000e+00> : vector<8x128xf32>
    %26 = tpu.matmul %23, %25, %cst_24 {dimension_numbers = #tpu.dot_dimension_numbers<[1], [0], [0], [1], [0, 0, 1, 1], [], []>} : vector<8x128xbf16>, vector<128x128xbf16>, vector<8x128xf32> -> vector<8x128xf32>
    %27 = arith.addf %18, %26 : vector<8x128xf32>
    %c0_25 = arith.constant 0 : index
    %c1_26 = arith.constant 1 : index
    %c128_27 = arith.constant 128 : index
    %28 = vector.load %arg2[%c0_25, %c1_26, %c128_27] : memref<1x8x384xbf16, #tpu.memory_space<vmem>>, vector<1x7x128xbf16>
    %29 = vector.shape_cast %28 : vector<1x7x128xbf16> to vector<7x128xbf16>
    %c0_28 = arith.constant 0 : index
    %c0_29 = arith.constant 0 : index
    %c128_30 = arith.constant 128 : index
    %30 = vector.load %arg3[%c0_28, %c0_29, %c128_30] : memref<1x8x384xbf16, #tpu.memory_space<vmem>>, vector<1x1x128xbf16>
    %31 = vector.shape_cast %30 : vector<1x1x128xbf16> to vector<1x128xbf16>
    %32 = tpu.concatenate %29, %31 in 0 : vector<7x128xbf16>, vector<1x128xbf16> -> vector<8x128xbf16>
    %c4 = arith.constant 4 : index
    %c0_31 = arith.constant 0 : index
    %c0_32 = arith.constant 0 : index
    %33 = vector.load %arg4[%c4, %c0_31, %c0_32] : memref<5x128x128xbf16, #tpu.memory_space<vmem>>, vector<1x128x128xbf16>
    %34 = vector.shape_cast %33 : vector<1x128x128xbf16> to vector<128x128xbf16>
    %cst_33 = arith.constant dense<0.000000e+00> : vector<8x128xf32>
    %35 = tpu.matmul %32, %34, %cst_33 {dimension_numbers = #tpu.dot_dimension_numbers<[1], [0], [0], [1], [0, 0, 1, 1], [], []>} : vector<8x128xbf16>, vector<128x128xbf16>, vector<8x128xf32> -> vector<8x128xf32>
    %36 = arith.addf %27, %35 : vector<8x128xf32>
    %c0_34 = arith.constant 0 : index
    %c0_35 = arith.constant 0 : index
    %37 = vector.load %arg5[%c0_34, %c0_35] : memref<1x128xf32, #tpu.memory_space<vmem>>, vector<1x128xf32>
    %38 = vector.broadcast %37 : vector<1x128xf32> to vector<8x128xf32>
    %39 = arith.addf %36, %38 : vector<8x128xf32>
    %cst_36 = arith.constant 1.000000e-01 : f32
    %40 = vector.broadcast %cst_36 : f32 to vector<8x128xf32>
    %41 = arith.mulf %40, %39 : vector<8x128xf32>
    %42 = arith.maximumf %39, %41 : vector<8x128xf32>
    %43 = arith.truncf %42 : vector<8x128xf32> to vector<8x128xbf16>
    %c0_37 = arith.constant 0 : index
    %c0_38 = arith.constant 0 : index
    %c0_39 = arith.constant 0 : index
    %44 = vector.load %arg6[%c0_37, %c0_38, %c0_39] : memref<1x8x128xbf16, #tpu.memory_space<vmem>>, vector<1x8x128xbf16>
    %45 = vector.shape_cast %44 : vector<1x8x128xbf16> to vector<8x128xbf16>
    %46 = vector.shape_cast %43 : vector<8x128xbf16> to vector<1x8x128xbf16>
    tpu.vector_store %arg6[%c0_37, %c0_38, %c0_39], %46 {strides = array<i32>} : memref<1x8x128xbf16, #tpu.memory_space<vmem>>, vector<1x8x128xbf16>,
    return
  }
  func.func @transform_0(%arg0: i32, %arg1: i32) -> (i32, i32, i32) {
    %c0_i32 = arith.constant 0 : i32
    %c0_i32_0 = arith.constant 0 : i32
    return %arg0, %arg1, %c0_i32 : i32, i32, i32
  }
  func.func @transform_1(%arg0: i32, %arg1: i32) -> (i32, i32, i32) {
    %c1_i32 = arith.constant 1 : i32
    %0 = arith.addi %arg1, %c1_i32 : i32
    %c1_i32_0 = arith.constant 1 : i32
    %1 = arith.muli %0, %c1_i32_0 : i32
    %c0_i32 = arith.constant 0 : i32
    %c0_i32_1 = arith.constant 0 : i32
    return %arg0, %1, %c0_i32 : i32, i32, i32
  }
  func.func @transform_2(%arg0: i32, %arg1: i32) -> (i32, i32, i32) {
    %c0_i32 = arith.constant 0 : i32
    %c0_i32_0 = arith.constant 0 : i32
    %c0_i32_1 = arith.constant 0 : i32
    %c0_i32_2 = arith.constant 0 : i32
    return %c0_i32, %c0_i32_0, %c0_i32_1 : i32, i32, i32
  }
  func.func @transform_3(%arg0: i32, %arg1: i32) -> (i32, i32) {
    %c0_i32 = arith.constant 0 : i32
    %c0_i32_0 = arith.constant 0 : i32
    %c0_i32_1 = arith.constant 0 : i32
    return %c0_i32, %c0_i32_0 : i32, i32
  }
  func.func @transform_4(%arg0: i32, %arg1: i32) -> (i32, i32, i32) {
    %c0_i32 = arith.constant 0 : i32
    %c0_i32_0 = arith.constant 0 : i32
    return %arg0, %arg1, %c0_i32 : i32, i32, i32
  }
}

module attributes {stable_mosaic.version = 11 : i64} {
  func.func @_conv_kx1_kernel(%arg0: i32, %arg1: i32, %arg2: memref<1x8x128xbf16, #tpu.memory_space<vmem>>, %arg3: memref<1x8x128xbf16, #tpu.memory_space<vmem>>, %arg4: memref<3x128x128xbf16, #tpu.memory_space<vmem>>, %arg5: memref<1x128xf32, #tpu.memory_space<vmem>>, %arg6: memref<1x8x128xbf16, #tpu.memory_space<vmem>>) attributes {dimension_semantics = [#tpu.dimension_semantics<parallel>, #tpu.dimension_semantics<parallel>], iteration_bounds = array<i64: 8, 1>, scalar_prefetch = 0 : i64, scratch_operands = 0 : i64, tpu.core_type = #tpu.core_type<tc>, window_params = [{transform_indices = @transform_0, window_bounds = array<i64: 1, 8, 128>}, {transform_indices = @transform_1, window_bounds = array<i64: 1, 8, 128>}, {pipeline_mode = #tpu.pipeline_mode<synchronous>, transform_indices = @transform_2, window_bounds = array<i64: 3, 128, 128>}, {pipeline_mode = #tpu.pipeline_mode<synchronous>, transform_indices = @transform_3, window_bounds = array<i64: 1, 128>}, {transform_indices = @transform_4, window_bounds = array<i64: 1, 8, 128>}]} {
    %cst = arith.constant 0.000000e+00 : f32
    %0 = vector.broadcast %cst : f32 to vector<8x128xf32>
    %c0 = arith.constant 0 : index
    %c0_0 = arith.constant 0 : index
    %c0_1 = arith.constant 0 : index
    %1 = vector.load %arg2[%c0, %c0_0, %c0_1] : memref<1x8x128xbf16, #tpu.memory_space<vmem>>, vector<1x8x128xbf16>
    %2 = vector.shape_cast %1 : vector<1x8x128xbf16> to vector<8x128xbf16>
    %c0_2 = arith.constant 0 : index
    %c0_3 = arith.constant 0 : index
    %c0_4 = arith.constant 0 : index
    %3 = vector.load %arg4[%c0_2, %c0_3, %c0_4] : memref<3x128x128xbf16, #tpu.memory_space<vmem>>, vector<1x128x128xbf16>
    %4 = vector.shape_cast %3 : vector<1x128x128xbf16> to vector<128x128xbf16>
    %cst_5 = arith.constant dense<0.000000e+00> : vector<8x128xf32>
    %5 = tpu.matmul %2, %4, %cst_5 {dimension_numbers = #tpu.dot_dimension_numbers<[1], [0], [0], [1], [0, 0, 1, 1], [], []>} : vector<8x128xbf16>, vector<128x128xbf16>, vector<8x128xf32> -> vector<8x128xf32>
    %6 = arith.addf %0, %5 : vector<8x128xf32>
    %c0_6 = arith.constant 0 : index
    %c1 = arith.constant 1 : index
    %c0_7 = arith.constant 0 : index
    %7 = vector.load %arg2[%c0_6, %c1, %c0_7] : memref<1x8x128xbf16, #tpu.memory_space<vmem>>, vector<1x7x128xbf16>
    %8 = vector.shape_cast %7 : vector<1x7x128xbf16> to vector<7x128xbf16>
    %c0_8 = arith.constant 0 : index
    %c0_9 = arith.constant 0 : index
    %c0_10 = arith.constant 0 : index
    %9 = vector.load %arg3[%c0_8, %c0_9, %c0_10] : memref<1x8x128xbf16, #tpu.memory_space<vmem>>, vector<1x1x128xbf16>
    %10 = vector.shape_cast %9 : vector<1x1x128xbf16> to vector<1x128xbf16>
    %11 = tpu.concatenate %8, %10 in 0 : vector<7x128xbf16>, vector<1x128xbf16> -> vector<8x128xbf16>
    %c1_11 = arith.constant 1 : index
    %c0_12 = arith.constant 0 : index
    %c0_13 = arith.constant 0 : index
    %12 = vector.load %arg4[%c1_11, %c0_12, %c0_13] : memref<3x128x128xbf16, #tpu.memory_space<vmem>>, vector<1x128x128xbf16>
    %13 = vector.shape_cast %12 : vector<1x128x128xbf16> to vector<128x128xbf16>
    %cst_14 = arith.constant dense<0.000000e+00> : vector<8x128xf32>
    %14 = tpu.matmul %11, %13, %cst_14 {dimension_numbers = #tpu.dot_dimension_numbers<[1], [0], [0], [1], [0, 0, 1, 1], [], []>} : vector<8x128xbf16>, vector<128x128xbf16>, vector<8x128xf32> -> vector<8x128xf32>
    %15 = arith.addf %6, %14 : vector<8x128xf32>
    %c0_15 = arith.constant 0 : index
    %c2 = arith.constant 2 : index
    %c0_16 = arith.constant 0 : index
    %16 = vector.load %arg2[%c0_15, %c2, %c0_16] : memref<1x8x128xbf16, #tpu.memory_space<vmem>>, vector<1x6x128xbf16>
    %17 = vector.shape_cast %16 : vector<1x6x128xbf16> to vector<6x128xbf16>
    %c0_17 = arith.constant 0 : index
    %c0_18 = arith.constant 0 : index
    %c0_19 = arith.constant 0 : index
    %18 = vector.load %arg3[%c0_17, %c0_18, %c0_19] : memref<1x8x128xbf16, #tpu.memory_space<vmem>>, vector<1x2x128xbf16>
    %19 = vector.shape_cast %18 : vector<1x2x128xbf16> to vector<2x128xbf16>
    %20 = tpu.concatenate %17, %19 in 0 : vector<6x128xbf16>, vector<2x128xbf16> -> vector<8x128xbf16>
    %c2_20 = arith.constant 2 : index
    %c0_21 = arith.constant 0 : index
    %c0_22 = arith.constant 0 : index
    %21 = vector.load %arg4[%c2_20, %c0_21, %c0_22] : memref<3x128x128xbf16, #tpu.memory_space<vmem>>, vector<1x128x128xbf16>
    %22 = vector.shape_cast %21 : vector<1x128x128xbf16> to vector<128x128xbf16>
    %cst_23 = arith.constant dense<0.000000e+00> : vector<8x128xf32>
    %23 = tpu.matmul %20, %22, %cst_23 {dimension_numbers = #tpu.dot_dimension_numbers<[1], [0], [0], [1], [0, 0, 1, 1], [], []>} : vector<8x128xbf16>, vector<128x128xbf16>, vector<8x128xf32> -> vector<8x128xf32>
    %24 = arith.addf %15, %23 : vector<8x128xf32>
    %c0_24 = arith.constant 0 : index
    %c0_25 = arith.constant 0 : index
    %25 = vector.load %arg5[%c0_24, %c0_25] : memref<1x128xf32, #tpu.memory_space<vmem>>, vector<1x128xf32>
    %26 = vector.broadcast %25 : vector<1x128xf32> to vector<8x128xf32>
    %27 = arith.addf %24, %26 : vector<8x128xf32>
    %28 = arith.truncf %27 : vector<8x128xf32> to vector<8x128xbf16>
    %c0_26 = arith.constant 0 : index
    %c0_27 = arith.constant 0 : index
    %c0_28 = arith.constant 0 : index
    %29 = vector.load %arg6[%c0_26, %c0_27, %c0_28] : memref<1x8x128xbf16, #tpu.memory_space<vmem>>, vector<1x8x128xbf16>
    %30 = vector.shape_cast %29 : vector<1x8x128xbf16> to vector<8x128xbf16>
    %31 = vector.shape_cast %28 : vector<8x128xbf16> to vector<1x8x128xbf16>
    tpu.vector_store %arg6[%c0_26, %c0_27, %c0_28], %31 {strides = array<i32>} : memref<1x8x128xbf16, #tpu.memory_space<vmem>>, vector<1x8x128xbf16>,
    return
  }
  func.func @transform_0(%arg0: i32, %arg1: i32) -> (i32, i32, i32) {
    %c0_i32 = arith.constant 0 : i32
    %c0_i32_0 = arith.constant 0 : i32
    return %arg0, %arg1, %c0_i32 : i32, i32, i32
  }
  func.func @transform_1(%arg0: i32, %arg1: i32) -> (i32, i32, i32) {
    %c1_i32 = arith.constant 1 : i32
    %0 = arith.addi %arg1, %c1_i32 : i32
    %c1_i32_0 = arith.constant 1 : i32
    %1 = arith.muli %0, %c1_i32_0 : i32
    %c0_i32 = arith.constant 0 : i32
    %c0_i32_1 = arith.constant 0 : i32
    return %arg0, %1, %c0_i32 : i32, i32, i32
  }
  func.func @transform_2(%arg0: i32, %arg1: i32) -> (i32, i32, i32) {
    %c0_i32 = arith.constant 0 : i32
    %c0_i32_0 = arith.constant 0 : i32
    %c0_i32_1 = arith.constant 0 : i32
    %c0_i32_2 = arith.constant 0 : i32
    return %c0_i32, %c0_i32_0, %c0_i32_1 : i32, i32, i32
  }
  func.func @transform_3(%arg0: i32, %arg1: i32) -> (i32, i32) {
    %c0_i32 = arith.constant 0 : i32
    %c0_i32_0 = arith.constant 0 : i32
    %c0_i32_1 = arith.constant 0 : i32
    return %c0_i32, %c0_i32_0 : i32, i32
  }
  func.func @transform_4(%arg0: i32, %arg1: i32) -> (i32, i32, i32) {
    %c0_i32 = arith.constant 0 : i32
    %c0_i32_0 = arith.constant 0 : i32
    return %arg0, %arg1, %c0_i32 : i32, i32, i32
  }
}

</mosaic_0001>

<bundles_post_ra>
// kernel: _forward.4
= control target key start
LH: loop header
LB: loop body
LE: loop exit
PB: predicated region body
PF: predicated region fallthrough
CT: control target
= control target key end

     0   :  { %s563_s12 = smov 0   ;;  %s565_s13 = smov 0   ;;  %s609_s0 = inlined_call_operand.vmem [shape: bf16[8,40,8], index: 0, kind: input, shape index: {}]   ;;  %s610_s1 = inlined_call_operand.vmem [shape: bf16[1,8,128], index: 1, kind: input, shape index: {}]   ;;  %s611_s2 = inlined_call_operand.vmem [shape: f32[1,128], index: 2, kind: input, shape index: {}]   ;;  %s612_s3 = inlined_call_operand.vmem [shape: bf16[8,34,128], index: 3, kind: output, shape index: {}]  }
   0x1   :  { %s567_s14 = smov 0  }
   0x2 LB: > { %s25_s15 = sadd.s32 1, %s535_s13  ;;  %p434_p0 = scmp.ge.s32.totalorder %s539_s14, 1  ;;  %s539_s14 = sphi %s567_s14, %s13_s14   ;;  %s535_s13 = sphi %s565_s13, %s614_s13   ;;  %s531_s12 = sphi %s563_s12, %s613_s12  }
   0x3   : > { %p27_p1 = scmp.ge.s32.totalorder %s25_s15, 8  ;;  %p158_p2 = scmp.lt.s32.totalorder %s539_s14, 9 }
   0x5   : > { %s616_s15 = smov (%p27_p1, %s25_s15), 0  ;;  %p159_p3 = pnand %p434_p0, %p158_p2 }
   0x6   : > { %p191_p4 = scmp.lt.s32.totalorder (!%p159_p3), %s531_s12, 7 }
   0x7   : > { %162 = sbr.rel (%p159_p3) target bundleno = 227 (0xe3), region = 32 }
   0xc   : > { %v216_v0 = vld [vmem:[%s610_s1] sm:$0xf]  ;;  %vm247_vm0 = vcmask 1043456   ;;  %v541_v1 = vmov 0.0   ;;  %s618_s12 = smov (!%p191_p4, %s531_s12), 7  ;;  %vm542_vm1 = vmmov 0  }
   0xd   : > { %471 = vmatprep.subr.bf16.mxu0 %v541_v1  ;;  %485 = vmatprep.subr.bf16.mxu1 %v541_v1  ;;  %v249_v2 = vsel %vm247_vm0, %v216_v0, 0  ;;  %s487_s18 = smul.u32 20, %s618_s12  ;;  %vm237_vm2 = vcmask 64512   ;;  %v437_v6 = vld [vmem:[%s611_s2] ss:$0 sm:$0xff] }
   0xe   : > { %472 = vmatpush3.bf16.msra.mxu0 %v249_v2  ;;  %486 = vmatpush3.bf16.msra.mxu1 %v249_v2 }
   0xf   : > { %473 = vmatprep.mubr.msk.bf16.mxu0 %vm542_vm1, %v541_v1  ;;  %477 = vmatprep.mubr.msk.bf16.mxu1 %vm542_vm1, %v541_v1  ;;  %s198_s21 = scalar_lea.vmem %s609_s0, %s487_s18  ;;  %s208_s26 = scalar_lea.vmem %s612_s3, %s487_s18 }
  0x10   : > { %v514_v3 = vld [vmem:[%s198_s21] sm:$0xff]   ;;  %v515_v4 = vld [vmem:[%s198_s21 + $0x8] sm:$0xff]   ;;  %v516_v5 = vld [vmem:[%s198_s21 + $0x10] ss:$0 sps:$4 sm:$0xff]  }
  0x11   : > { %474 = vmatmul.mubr.msk.bf16.vlgmr.msra.gmra.mxu0 %vm237_vm2, %v514_v3  ;;  %478 = vmatmul.mubr.msk.bf16.vlgmr.msra.gmra.mxu1 %vm237_vm2, %v515_v4 }
  0x12   : > { %481 = vmatprep.mubr.msk.bf16.mxu1 %vm542_vm1, %v541_v1 }
  0x19   : > { %482 = vmatmul.mubr.msk.bf16.gmra.mxu1 %vm237_vm2, %v516_v5 }
  0xd1   : > { %v285_v7 = vpop.f32.mrf.mxu0  ;;  %v293_v9 = vpop.f32.mrf.mxu1 }
  0xd2   : > { %v286_v8 = vadd.f32 %v437_v6, %v285_v7  ;;  %v294_v10 = vadd.f32 %v437_v6, %v293_v9 }
  0xd3   : > { %v475_v11 = vpop.f32.mrf.mxu0  ;;  %v479_v12 = vpop.f32.mrf.mxu1 }
  0xd4   : > { %v307_v14 = vmul.f32 0.1, %v286_v8  ;;  %v309_v17 = vmul.f32 0.1, %v294_v10 }
  0xd5   : > { %v288_v13 = vpop.f32.mrf.mxu0  ;;  %v296_v16 = vpop.f32.mrf.mxu1 }
  0xd6   : > { %v289_v15 = vadd.f32 %v437_v6, %v288_v13  ;;  %v297_v18 = vadd.f32 %v437_v6, %v296_v16  ;;  %v312_v23 = vmax.f32 %v286_v8, %v307_v14  ;;  %v314_v26 = vmax.f32 %v294_v10, %v309_v17 }
  0xd7   : > { %v476_v19 = vpop.f32.mrf.mxu0  ;;  %v480_v21 = vpop.f32.mrf.mxu1 }
  0xd8   : > { %v308_v20 = vmul.f32 0.1, %v289_v15  ;;  %v310_v22 = vmul.f32 0.1, %v297_v18 }
  0xd9   : > { %v301_v25 = vpop.f32.mrf.mxu1 }
  0xda   : > { %v313_v24 = vmax.f32 %v289_v15, %v308_v20  ;;  %v315_v27 = vmax.f32 %v297_v18, %v310_v22  ;;  %v302_v28 = vadd.f32 %v437_v6, %v301_v25 }
  0xdb   : > { %v483_v30 = vpop.f32.mrf.mxu1 }
  0xdc   : > { %v459_v29 = vpack.c.bf16 %v313_v24, %v312_v23  ;;  %v464_v31 = vpack.c.bf16 %v315_v27, %v314_v26  ;;  %v311_v32 = vmul.f32 0.1, %v302_v28 }
  0xdd   : > { %v304_v33 = vpop.f32.mrf.mxu1 }
  0xde   : > { %460 = vst [vmem:[%s208_s26] sm:$0xff] %v459_v29   ;;  %466 = vst [vmem:[%s208_s26 + $0x8] sm:$0xff] %v464_v31   ;;  %v316_v34 = vmax.f32 %v302_v28, %v311_v32 }
  0xdf   : > { %v484_v35 = vpop.f32.mrf.mxu1 }
  0xe0   : > { %v455_v36 = vpack.c.bf16 %v316_v34, %v316_v34 }
  0xe2   : > { %342 = vst [vmem:[%s208_s26 + $0x10] sm:$0xf] %v455_v36 }
  0xe3 PF: > { %s13_s14 = sadd.s32 1, %s539_s14   ;;  %s613_s12 = smov %s535_s13 }
  0xe4   : > { %p10_p5 = scmp.ge.s32.totalorder %s13_s14, 10   ;;  %s614_s13 = smov %s616_s15 }
  0xe6   :  { %12 = sbr.rel (!%p10_p5) target bundleno = 2 (0x2), region = 62 }

// kernel: _forward.5
= control target key start
LH: loop header
LB: loop body
LE: loop exit
PB: predicated region body
PF: predicated region fallthrough
CT: control target
= control target key end

     0   :  { %s1449_s15 = smov 0   ;;  %s1451_s16 = smov 0   ;;  %s1688_s0 = inlined_call_operand.vmem [shape: bf16[8,24,384], index: 0, kind: input, shape index: {}, may-alias: {0,1}]   ;;  %s1689_s1 = inlined_call_operand.vmem [shape: bf16[8,24,384], index: 1, kind: input, shape index: {}, may-alias: {0,1}]   ;;  %s1690_s2 = inlined_call_operand.vmem [shape: bf16[5,128,128], index: 2, kind: input, shape index: {}]   ;;  %s1691_s3 = inlined_call_operand.vmem [shape: f32[1,128], index: 3, kind: input, shape index: {}]   ;;  %s1692_s4 = inlined_call_operand.vmem [shape: bf16[8,12,128], index: 4, kind: output, shape index: {}]  }
   0x1   :  { %s1453_s17 = smov 0  }
   0x2 LB: > { %s26_s18 = sadd.s32 1, %s1416_s16  ;;  %p1050_p0 = scmp.ge.s32.totalorder %s1420_s17, 1  ;;  %s1420_s17 = sphi %s1453_s17, %s14_s17   ;;  %s1416_s16 = sphi %s1451_s16, %s1696_s16   ;;  %s1412_s15 = sphi %s1449_s15, %s1695_s15  }
   0x3   : > { %p28_p1 = scmp.ge.s32.totalorder %s26_s18, 8  ;;  %p218_p2 = scmp.lt.s32.totalorder %s1420_s17, 9 }
   0x5   : > { %s1698_s18 = smov (%p28_p1, %s26_s18), 0  ;;  %p219_p3 = pnand %p1050_p0, %p218_p2 }
   0x6   : > { %p275_p4 = scmp.lt.s32.totalorder (!%p219_p3), %s1412_s15, 7 }
   0x7   : > { %222 = sbr.rel (%p219_p3) target bundleno = 317 (0x13d), region = 36 }
   0xc   : > { %v1353_v0 = vld [vmem:[%s1690_s2 + $0x78] sm:$0xff]   ;;  %v1422_v1 = vmov 0.0   ;;  %v1355_v3 = vld [vmem:[%s1690_s2 + $0x70] sm:$0xff]   ;;  %vm1423_vm0 = vmmov 0   ;;  %s1700_s15 = smov (!%p275_p4, %s1412_s15), 7  ;;  %v1357_v5 = vld [vmem:[%s1690_s2 + $0x68] sm:$0xff]  }
   0xd   : > { %1224 = vmatprep.subr.bf16.mxu0 %v1422_v1  ;;  %1244 = vmatprep.subr.bf16.mxu1 %v1422_v1  ;;  %v1354_v2 = vld [vmem:[%s1690_s2 + $0x38] sm:$0xff]   ;;  %v1356_v4 = vld [vmem:[%s1690_s2 + $0x30] sm:$0xff]   ;;  %v1358_v6 = vld [vmem:[%s1690_s2 + $0x28] sm:$0xff]   ;;  %s1324_s9 = smul.u32 36, %s1700_s15  ;;  %vm674_vm1 = vcmask 1047552  }
   0xe   : > { %1225 = vmatpush3.bf16.msra.mxu0 %v1353_v0  ;;  %1240 = vmatprep.mubr.msk.bf16.mxu0 %vm1423_vm0, %v1422_v1  ;;  %v1359_v7 = vld [vmem:[%s1690_s2 + $0x60] sm:$0xff]   ;;  %v1361_v9 = vld [vmem:[%s1690_s2 + $0x58] sm:$0xff]   ;;  %v1363_v11 = vld [vmem:[%s1690_s2 + $0x50] sm:$0xff]   ;;  %vm675_vm2 = vsmask.f32 7424 }
   0xf   : > { %1245 = vmatpush3.bf16.msra.mxu1 %v1354_v2  ;;  %1226 = vmatprep.subr.bf16.mxu0 %v1422_v1  ;;  %v1360_v8 = vld [vmem:[%s1690_s2 + $0x20] sm:$0xff]   ;;  %v1362_v10 = vld [vmem:[%s1690_s2 + $0x18] sm:$0xff]   ;;  %s1518_s20 = scalar_lea.vmem %s1688_s0, %s1324_s9  ;;  %v1364_v12 = vld [vmem:[%s1690_s2 + $0x10] sm:$0xff]   ;;  %s1170_s12 = sadd.s32 24, %s1324_s9 }
  0x10   : > { %1246 = vmatprep.subr.bf16.mxu1 %v1422_v1  ;;  %1260 = vmatprep.mubr.msk.bf16.mxu1 %vm1423_vm0, %v1422_v1  ;;  %v1365_v13 = vld [vmem:[%s1690_s2 + $0x48] sm:$0xff]   ;;  %v1367_v15 = vld [vmem:[%s1690_s2 + $0x40] sm:$0xff]   ;;  %v1371_v19 = vld [vmem:[%s1690_s2 + $0xb8] sm:$0xff]   ;;  %s1570_s24 = scalar_lea.vmem %s1689_s1, %s1170_s12  ;;  %s1171_s9 = sshll.u32 %s1700_s15, 3 }
  0x11   : > { %v1366_v14 = vld [vmem:[%s1690_s2 + $0x8] sm:$0xff]   ;;  %v1368_v16 = vld [vmem:[%s1690_s2] sm:$0xff]   ;;  %v1372_v20 = vld [vmem:[%s1690_s2 + $0xf8] sm:$0xff]   ;;  %s311_s27 = scalar_lea.vmem %s1692_s4, %s1171_s9 }
  0x12   : > { %1227 = vmatpush3.bf16.msra.mxu0 %v1355_v3  ;;  %v1546_v17 = vld [vmem:[%s1518_s20 + $0x4] ss:$12 sps:$4 sm:$0xff]   ;;  %v1370_v18 = vld [vmem:[%s1518_s20] ss:$12 sps:$4 sm:$0xff]   ;;  %v1379_v27 = vld [vmem:[%s1690_s2 + $0x98] sm:$0xff]  }
  0x13   : > { %1247 = vmatpush3.bf16.msra.mxu1 %v1356_v4  ;;  %1228 = vmatprep.subr.bf16.mxu0 %v1422_v1  ;;  %v1373_v21 = vld [vmem:[%s1690_s2 + $0xb0] sm:$0xff]   ;;  %v1375_v23 = vld [vmem:[%s1690_s2 + $0xa8] sm:$0xff]   ;;  %v1377_v25 = vld [vmem:[%s1690_s2 + $0xa0] sm:$0xff]   ;;  %v661_v30 = vshll.u32 %v1370_v18, 16  ;;  %v659_v34 = vshrl.u32 %v1370_v18, 16  ;;  %v790_v50 = vshll.u32 %v1546_v17, 16 }
  0x14   : > { %1248 = vmatprep.subr.bf16.mxu1 %v1422_v1  ;;  %v1374_v22 = vld [vmem:[%s1690_s2 + $0xf0] sm:$0xff]   ;;  %v1376_v24 = vld [vmem:[%s1690_s2 + $0xe8] sm:$0xff]   ;;  %v1378_v26 = vld [vmem:[%s1690_s2 + $0xe0] sm:$0xff]   ;;  %v788_v53 = vshrl.u32 %v1546_v17, 16 }
  0x15   : > { %v1380_v28 = vld [vmem:[%s1690_s2 + $0xd8] sm:$0xff]   ;;  %v1381_v29 = vld [vmem:[%s1690_s2 + $0x90] sm:$0xff]   ;;  %v1389_v32 = vld [vmem:[%s1570_s24] ss:$0 sps:$4 sm:$0x11]   ;;  %v663_v35 = vrot.slane %v661_v30, 1 }
  0x16   : > { %1229 = vmatpush3.bf16.msra.mxu0 %v1357_v5  ;;  %v1382_v31 = vld [vmem:[%s1690_s2 + $0xd0] sm:$0xff]   ;;  %v1383_v33 = vld [vmem:[%s1690_s2 + $0x88] sm:$0xff]   ;;  %v670_v37 = vshll.u32 %v1389_v32, 16  ;;  %v1385_v38 = vld [vmem:[%s1690_s2 + $0x80] sm:$0xff]   ;;  %v792_v54 = vrot.slane %v790_v50, 1 }
  0x17   : > { %1249 = vmatpush3.bf16.msra.mxu1 %v1358_v6  ;;  %1230 = vmatprep.subr.bf16.mxu0 %v1422_v1  ;;  %v1384_v36 = vld [vmem:[%s1690_s2 + $0xc8] sm:$0xff]   ;;  %v1386_v39 = vld [vmem:[%s1690_s2 + $0xc0] sm:$0xff]   ;;  %v664_v40 = vor.u32 %v663_v35, %v659_v34  ;;  %vm1626_vm3 = vmand %vm674_vm1, %vm675_vm2 }
  0x18   : > { %1250 = vmatprep.subr.bf16.mxu1 %v1422_v1  ;;  %v672_v41 = vrot.slane %v670_v37, 1  ;;  %v1387_v43 = vld [vmem:[%s1518_s20 + $0x8] ss:$12 sps:$4 sm:$0xff]   ;;  %v1388_v44 = vld [vmem:[%s1690_s2 + $0x138] sm:$0xff]   ;;  %v1392_v48 = vld [vmem:[%s1690_s2 + $0x120] sm:$0xff]   ;;  %v793_v58 = vor.u32 %v792_v54, %v788_v53 }
  0x19   : > { %v1390_v46 = vld [vmem:[%s1690_s2 + $0x130] sm:$0xff]   ;;  %v1391_v47 = vld [vmem:[%s1690_s2 + $0x128] sm:$0xff]   ;;  %v1393_v49 = vld [vmem:[%s1690_s2 + $0x118] sm:$0xff]  }
  0x1a   : > { %1231 = vmatpush3.bf16.msra.mxu0 %v1359_v7  ;;  %v677_v45 = vsel %vm1626_vm3, %v664_v40, %v672_v41  ;;  %v1394_v51 = vld [vmem:[%s1690_s2 + $0x110] sm:$0xff]   ;;  %v1397_v52 = vld [vmem:[%s1570_s24 + $0x4] ss:$0 sps:$4 sm:$0x11]   ;;  %v1395_v55 = vld [vmem:[%s1690_s2 + $0x108] sm:$0xff]  }
  0x1b   : > { %1251 = vmatpush3.bf16.msra.mxu1 %v1360_v8  ;;  %1232 = vmatprep.subr.bf16.mxu0 %v1422_v1  ;;  %v799_v56 = vshll.u32 %v1397_v52, 16  ;;  %v1396_v57 = vld [vmem:[%s1690_s2 + $0x100] sm:$0xff]  }
  0x1c   : > { %1252 = vmatprep.subr.bf16.mxu1 %v1422_v1 }
  0x1d   : > { %v801_v59 = vrot.slane %v799_v56, 1 }
  0x1e   : > { %1233 = vmatpush3.bf16.msra.mxu0 %v1361_v9 }
  0x1f   : > { %1253 = vmatpush3.bf16.msra.mxu1 %v1362_v10  ;;  %1234 = vmatprep.subr.bf16.mxu0 %v1422_v1  ;;  %v803_v60 = vsel %vm1626_vm3, %v793_v58, %v801_v59 }
  0x20   : > { %1254 = vmatprep.subr.bf16.mxu1 %v1422_v1 }
  0x22   : > { %1235 = vmatpush3.bf16.msra.mxu0 %v1363_v11 }
  0x23   : > { %1255 = vmatpush3.bf16.msra.mxu1 %v1364_v12  ;;  %1236 = vmatprep.subr.bf16.mxu0 %v1422_v1 }
  0x24   : > { %1256 = vmatprep.subr.bf16.mxu1 %v1422_v1 }
  0x26   : > { %1237 = vmatpush3.bf16.msra.mxu0 %v1365_v13 }
  0x27   : > { %1257 = vmatpush3.bf16.msra.mxu1 %v1366_v14  ;;  %1238 = vmatprep.subr.bf16.mxu0 %v1422_v1 }
  0x28   : > { %1258 = vmatprep.subr.bf16.mxu1 %v1422_v1 }
  0x2a   : > { %1239 = vmatpush3.bf16.msra.mxu0 %v1367_v15 }
  0x2b   : > { %1259 = vmatpush3.bf16.msra.mxu1 %v1368_v16  ;;  %1264 = vmatprep.subr.bf16.mxu0 %v1422_v1 }
  0x2c   : > { %1284 = vmatprep.subr.bf16.mxu1 %v1422_v1 }
  0x2d   : > { %1241 = vmatmul.mubr.bf16.vlgmr.msra.gmra.mxu0 %v1546_v17 }
  0x2e   : > { %1261 = vmatmul.mubr.bf16.vlgmr.msra.gmra.mxu1 %v1370_v18  ;;  %1265 = vmatpush3.bf16.msra.mxu0 %v1371_v19  ;;  %v1164_v19 = vld [vmem:[%s1691_s3] ss:$0 sm:$0xff] }
  0x2f   : > { %1285 = vmatpush3.bf16.msra.mxu1 %v1372_v20  ;;  %1266 = vmatprep.subr.bf16.mxu0 %v1422_v1 }
  0x30   : > { %1286 = vmatprep.subr.bf16.mxu1 %v1422_v1  ;;  %1280 = vmatprep.mubr.msk.bf16.mxu0 %vm1423_vm0, %v1422_v1 }
  0x31   : > { %1300 = vmatprep.mubr.msk.bf16.mxu1 %vm1423_vm0, %v1422_v1 }
  0x32   : > { %1267 = vmatpush3.bf16.msra.mxu0 %v1373_v21 }
  0x33   : > { %1287 = vmatpush3.bf16.msra.mxu1 %v1374_v22  ;;  %1268 = vmatprep.subr.bf16.mxu0 %v1422_v1 }
  0x34   : > { %1288 = vmatprep.subr.bf16.mxu1 %v1422_v1 }
  0x36   : > { %1269 = vmatpush3.bf16.msra.mxu0 %v1375_v23 }
  0x37   : > { %1289 = vmatpush3.bf16.msra.mxu1 %v1376_v24  ;;  %1270 = vmatprep.subr.bf16.mxu0 %v1422_v1 }
  0x38   : > { %1290 = vmatprep.subr.bf16.mxu1 %v1422_v1 }
  0x3a   : > { %1271 = vmatpush3.bf16.msra.mxu0 %v1377_v25 }
  0x3b   : > { %1291 = vmatpush3.bf16.msra.mxu1 %v1378_v26  ;;  %1272 = vmatprep.subr.bf16.mxu0 %v1422_v1 }
  0x3c   : > { %1292 = vmatprep.subr.bf16.mxu1 %v1422_v1 }
  0x3e   : > { %1273 = vmatpush3.bf16.msra.mxu0 %v1379_v27 }
  0x3f   : > { %1293 = vmatpush3.bf16.msra.mxu1 %v1380_v28  ;;  %1274 = vmatprep.subr.bf16.mxu0 %v1422_v1 }
  0x40   : > { %1294 = vmatprep.subr.bf16.mxu1 %v1422_v1 }
  0x42   : > { %1275 = vmatpush3.bf16.msra.mxu0 %v1381_v29 }
  0x43   : > { %1295 = vmatpush3.bf16.msra.mxu1 %v1382_v31  ;;  %1276 = vmatprep.subr.bf16.mxu0 %v1422_v1 }
  0x44   : > { %1296 = vmatprep.subr.bf16.mxu1 %v1422_v1 }
  0x46   : > { %1277 = vmatpush3.bf16.msra.mxu0 %v1383_v33 }
  0x47   : > { %1297 = vmatpush3.bf16.msra.mxu1 %v1384_v36  ;;  %1278 = vmatprep.subr.bf16.mxu0 %v1422_v1 }
  0x48   : > { %1298 = vmatprep.subr.bf16.mxu1 %v1422_v1 }
  0x4a   : > { %1279 = vmatpush3.bf16.msra.mxu0 %v1385_v38 }
  0x4b   : > { %1299 = vmatpush3.bf16.msra.mxu1 %v1386_v39  ;;  %1304 = vmatprep.subr.bf16.mxu0 %v1422_v1 }
  0x4d   : > { %1281 = vmatmul.mubr.bf16.vlgmr.msra.gmra.mxu0 %v1387_v43 }
  0x4e   : > { %1305 = vmatpush3.bf16.msra.mxu0 %v1388_v44  ;;  %1301 = vmatmul.mubr.bf16.vlgmr.msra.gmra.mxu1 %v677_v45 }
  0x4f   : > { %1306 = vmatprep.subr.bf16.mxu0 %v1422_v1  ;;  %1320 = vmatprep.mubr.msk.bf16.mxu0 %vm1423_vm0, %v1422_v1 }
  0x52   : > { %1307 = vmatpush3.bf16.msra.mxu0 %v1390_v46 }
  0x53   : > { %1308 = vmatprep.subr.bf16.mxu0 %v1422_v1 }
  0x56   : > { %1309 = vmatpush3.bf16.msra.mxu0 %v1391_v47 }
  0x57   : > { %1310 = vmatprep.subr.bf16.mxu0 %v1422_v1 }
  0x5a   : > { %1311 = vmatpush3.bf16.msra.mxu0 %v1392_v48 }
  0x5b   : > { %1312 = vmatprep.subr.bf16.mxu0 %v1422_v1 }
  0x5e   : > { %1313 = vmatpush3.bf16.msra.mxu0 %v1393_v49 }
  0x5f   : > { %1314 = vmatprep.subr.bf16.mxu0 %v1422_v1 }
  0x62   : > { %1315 = vmatpush3.bf16.msra.mxu0 %v1394_v51 }
  0x63   : > { %1316 = vmatprep.subr.bf16.mxu0 %v1422_v1 }
  0x66   : > { %1317 = vmatpush3.bf16.msra.mxu0 %v1395_v55 }
  0x67   : > { %1318 = vmatprep.subr.bf16.mxu0 %v1422_v1 }
  0x6a   : > { %1319 = vmatpush3.bf16.msra.mxu0 %v1396_v57 }
  0x6d   : > { %1321 = vmatmul.mubr.bf16.vlgmr.msra.gmra.mxu0 %v803_v60 }
  0xed   : > { %v439_v61 = vpop.f32.mrf.mxu0 }
  0xee   : > { %v534_v62 = vpop.f32.mrf.mxu1 }
  0xef   : > { %v1242_v63 = vpop.f32.mrf.mxu0  ;;  %v535_v13 = vadd.f32 %v534_v62, %v439_v61 }
  0xf0   : > { %v1262_v0 = vpop.f32.mrf.mxu1 }
  0xf1   : > { %v442_v2 = vpop.f32.mrf.mxu0 }
  0xf2   : > { %v537_v3 = vpop.f32.mrf.mxu1 }
  0xf3   : > { %v1243_v4 = vpop.f32.mrf.mxu0  ;;  %v538_v15 = vadd.f32 %v537_v3, %v442_v2 }
  0xf4   : > { %v1263_v5 = vpop.f32.mrf.mxu1 }
 0x10d   : > { %v648_v6 = vpop.f32.mrf.mxu0 }
 0x10e   : > { %v777_v7 = vpop.f32.mrf.mxu1  ;;  %v655_v14 = vadd.f32 %v648_v6, %v535_v13 }
 0x10f   : > { %v1282_v8 = vpop.f32.mrf.mxu0 }
 0x110   : > { %v1302_v9 = vpop.f32.mrf.mxu1  ;;  %v784_v16 = vadd.f32 %v777_v7, %v655_v14 }
 0x111   : > { %v651_v10 = vpop.f32.mrf.mxu0 }
 0x112   : > { %v780_v11 = vpop.f32.mrf.mxu1  ;;  %v656_v17 = vadd.f32 %v651_v10, %v538_v15 }
 0x113   : > { %v1283_v1 = vpop.f32.mrf.mxu0 }
 0x114   : > { %v1303_v12 = vpop.f32.mrf.mxu1  ;;  %v785_v22 = vadd.f32 %v780_v11, %v656_v17 }
 0x12d   : > { %v903_v18 = vpop.f32.mrf.mxu0 }
 0x12e   : > { %v910_v20 = vadd.f32 %v903_v18, %v784_v16 }
 0x12f   : > { %v1322_v21 = vpop.f32.mrf.mxu0 }
 0x130   : > { %v919_v23 = vadd.f32 %v1164_v19, %v910_v20 }
 0x131   : > { %v906_v24 = vpop.f32.mrf.mxu0 }
 0x132   : > { %v911_v25 = vadd.f32 %v906_v24, %v785_v22  ;;  %v921_v27 = vmul.f32 0.1, %v919_v23 }
 0x133   : > { %v1323_v26 = vpop.f32.mrf.mxu0 }
 0x134   : > { %v920_v28 = vadd.f32 %v1164_v19, %v911_v25  ;;  %v923_v30 = vmax.f32 %v919_v23, %v921_v27 }
 0x136   : > { %v922_v29 = vmul.f32 0.1, %v920_v28 }
 0x138   : > { %v924_v31 = vmax.f32 %v920_v28, %v922_v29 }
 0x13a   : > { %v1177_v32 = vpack.c.bf16 %v924_v31, %v923_v30 }
 0x13c   : > { %1178 = vst [vmem:[%s311_s27] sm:$0xff] %v1177_v32  }
 0x13d PF: > { %s14_s17 = sadd.s32 1, %s1420_s17   ;;  %s1695_s15 = smov %s1416_s16 }
 0x13e   : > { %p11_p5 = scmp.ge.s32.totalorder %s14_s17, 10   ;;  %s1696_s16 = smov %s1698_s18 }
 0x140   :  { %13 = sbr.rel (!%p11_p5) target bundleno = 2 (0x2), region = 73 }

// kernel: _forward.6
= control target key start
LH: loop header
LB: loop body
LE: loop exit
PB: predicated region body
PF: predicated region fallthrough
CT: control target
= control target key end

     0   :  { %s1517_s15 = smov 0   ;;  %s1519_s16 = smov 0   ;;  %s1788_s0 = inlined_call_operand.vmem [shape: bf16[8,16,384], index: 0, kind: input, shape index: {}, may-alias: {0,1}]   ;;  %s1789_s1 = inlined_call_operand.vmem [shape: bf16[8,16,384], index: 1, kind: input, shape index: {}, may-alias: {0,1}]   ;;  %s1790_s2 = inlined_call_operand.vmem [shape: bf16[5,128,128], index: 2, kind: input, shape index: {}]   ;;  %s1791_s3 = inlined_call_operand.vmem [shape: f32[1,128], index: 3, kind: input, shape index: {}]   ;;  %s1792_s4 = inlined_call_operand.vmem [shape: bf16[8,4,128], index: 4, kind: output, shape index: {}]  }
   0x1   :  { %s1521_s17 = smov 0   ;;  %s1523_s18 = smov 0  }
   0x2   :  { %s1525_s19 = smov 0  }
   0x3 LB: > { %s1037_s20 = sadd.s32 4294967295, %s1484_s19   ;;  %s26_s21 = sadd.s32 1, %s1480_s18  ;;  %s1484_s19 = sphi %s1525_s19, %s14_s19   ;;  %s1480_s18 = sphi %s1523_s18, %s1799_s18   ;;  %s1476_s17 = sphi %s1521_s17, %s1798_s17   ;;  %s1472_s16 = sphi %s1519_s16, %s1797_s16   ;;  %s1468_s15 = sphi %s1517_s15, %s1796_s15  }
   0x4   : > { %p28_p0 = scmp.ge.s32.totalorder %s26_s21, 8  ;;  %s135_s22 = sadd.s32 1, %s1472_s16 }
   0x5   : > { %p145_p1 = scmp.ne.s32.totalorder %s1472_s16, %s1468_s15  ;;  %p146_p2 = scmp.eq.s32.totalorder %s1037_s20, 7 }
   0x6   : > { %s1801_s21 = smov (%p28_p0, %s26_s21), 0  ;;  %p1041_p4 = scmp.ge.s32.totalorder %s1484_s19, 1 }
   0x7   : > { %p1549_p3 = por %p146_p2, %p145_p1  ;;  %s130_s24 = ssub.s32 %s1480_s18, %s1801_s21 }
   0x8   : > { %p202_p5 = scmp.lt.s32.totalorder %s1484_s19, 9  ;;  %p133_p6 = scmp.eq.s32.totalorder %s130_s24, 0 }
   0xa   : > { %p203_p7 = pnand %p1041_p4, %p202_p5 }
   0xb   : > { %s1558_s25 = scalar_select %p133_p6, %s1472_s16, %s135_s22  }
   0xc   : > { %206 = sbr.rel (%p203_p7) target bundleno = 326 (0x146), region = 36  ;;  %p241_p8 = scmp.lt.s32.totalorder (!%p203_p7), %s1476_s17, 7 }
   0xd   : > { %s238_s30 = sand.u32 (!%p203_p7), 1, %s1468_s15  }
   0xe   : > { %s1042_s5 = sshll.u32 (!%p203_p7), %s238_s30, 2 }
   0xf   : > { %s240_s6 = scalar_lea.vmem (!%p203_p7), [#allocation2], %s1042_s5  }
  0x11   : > { %v1386_v0 = vld [vmem:[%s1790_s2 + $0x78] sm:$0xff]   ;;  %v1490_v1 = vmov 0.0   ;;  %v1388_v3 = vld [vmem:[%s1790_s2 + $0x70] sm:$0xff]   ;;  %vm1491_vm0 = vmmov 0   ;;  %s1582_s8 = scalar_select %p241_p8, %s1476_s17, 7  ;;  %v1390_v5 = vld [vmem:[%s1790_s2 + $0x68] sm:$0xff]  }
  0x12   : > { %1208 = vmatprep.subr.bf16.mxu0 %v1490_v1  ;;  %1228 = vmatprep.subr.bf16.mxu1 %v1490_v1  ;;  %v1387_v2 = vld [vmem:[%s1790_s2 + $0x38] sm:$0xff]   ;;  %v1389_v4 = vld [vmem:[%s1790_s2 + $0x30] sm:$0xff]   ;;  %v1391_v6 = vld [vmem:[%s1790_s2 + $0x28] sm:$0xff]   ;;  %vm603_vm1 = vcmask 1043456   ;;  %vm604_vm2 = vsmask.f32 3328 }
  0x13   : > { %1209 = vmatpush3.bf16.msra.mxu0 %v1386_v0  ;;  %1224 = vmatprep.mubr.msk.bf16.mxu0 %vm1491_vm0, %v1490_v1  ;;  %v1392_v7 = vld [vmem:[%s1790_s2 + $0x60] sm:$0xff]   ;;  %v1394_v9 = vld [vmem:[%s1790_s2 + $0x58] sm:$0xff]   ;;  %v1396_v11 = vld [vmem:[%s1790_s2 + $0x50] sm:$0xff]   ;;  %s1308_s10 = smul.u32 24, %s1582_s8  ;;  %s1156_s7 = sshll.u32 (%p1549_p3), %s1476_s17, 1 }
  0x14   : > { %1229 = vmatpush3.bf16.msra.mxu1 %v1387_v2  ;;  %1210 = vmatprep.subr.bf16.mxu0 %v1490_v1  ;;  %v1393_v8 = vld [vmem:[%s1790_s2 + $0x20] sm:$0xff]   ;;  %v1395_v10 = vld [vmem:[%s1790_s2 + $0x18] sm:$0xff]   ;;  %v1397_v12 = vld [vmem:[%s1790_s2 + $0x10] sm:$0xff]   ;;  %s877_s11 = scalar_lea.vmem (%p1549_p3), %s1792_s4, %s1156_s7   ;;  %s1486_s15 = smov (%p1549_p3), 0  }
  0x15   : > { %1230 = vmatprep.subr.bf16.mxu1 %v1490_v1  ;;  %1244 = vmatprep.mubr.msk.bf16.mxu1 %vm1491_vm0, %v1490_v1  ;;  %v1398_v13 = vld [vmem:[%s1790_s2 + $0x48] sm:$0xff]   ;;  %s1628_s20 = scalar_lea.vmem %s1788_s0, %s1308_s10  ;;  %v1400_v15 = vld [vmem:[%s1790_s2 + $0x40] sm:$0xff]   ;;  %s1162_s27 = sadd.s32 12, %s1308_s10  ;;  %v1404_v19 = vld [vmem:[%s1790_s2 + $0xb8] sm:$0xff]  }
  0x16   : > { %v1399_v14 = vld [vmem:[%s1790_s2 + $0x8] sm:$0xff]   ;;  %v1401_v16 = vld [vmem:[%s1790_s2] sm:$0xff]   ;;  %v1405_v20 = vld [vmem:[%s1790_s2 + $0xf8] sm:$0xff]   ;;  %s1653_s9 = scalar_lea.vmem %s1789_s1, %s1162_s27 }
  0x17   : > { %1211 = vmatpush3.bf16.msra.mxu0 %v1388_v3  ;;  %v1639_v17 = vld [vmem:[%s1628_s20 + $0x4] sm:$0xf]  ;;  %v265_v18 = vld [vmem:[%s1628_s20] sm:$0xf]  ;;  %v1406_v21 = vld [vmem:[%s1790_s2 + $0xb0] sm:$0xff]  }
  0x18   : > { %1231 = vmatpush3.bf16.msra.mxu1 %v1389_v4  ;;  %1212 = vmatprep.subr.bf16.mxu0 %v1490_v1  ;;  %v1407_v22 = vld [vmem:[%s1790_s2 + $0xf0] sm:$0xff]   ;;  %v1408_v23 = vld [vmem:[%s1790_s2 + $0xa8] sm:$0xff]   ;;  %v1410_v25 = vld [vmem:[%s1790_s2 + $0xa0] sm:$0xff]   ;;  %v1101_v28 = vcombine.low %v265_v18, %v265_v18  ;;  %v1127_v50 = vcombine.low %v1639_v17, %v1639_v17 }
  0x19   : > { %1232 = vmatprep.subr.bf16.mxu1 %v1490_v1  ;;  %v1409_v24 = vld [vmem:[%s1790_s2 + $0xe8] sm:$0xff]   ;;  %v1411_v26 = vld [vmem:[%s1790_s2 + $0xe0] sm:$0xff]   ;;  %v1412_v27 = vld [vmem:[%s1790_s2 + $0x98] sm:$0xff]  }
  0x1a   : > { %v1413_v29 = vld [vmem:[%s1790_s2 + $0xd8] sm:$0xff]   ;;  %v1414_v30 = vld [vmem:[%s1790_s2 + $0x90] sm:$0xff]   ;;  %v590_v31 = vshll.u32 %v1101_v28, 16  ;;  %v1421_v33 = vld [vmem:[%s1653_s9] ss:$0 sps:$4 sm:$0x11]  }
  0x1b   : > { %1213 = vmatpush3.bf16.msra.mxu0 %v1390_v5  ;;  %v1415_v32 = vld [vmem:[%s1790_s2 + $0xd0] sm:$0xff]   ;;  %v1416_v34 = vld [vmem:[%s1790_s2 + $0x88] sm:$0xff]   ;;  %v588_v35 = vshrl.u32 %v1101_v28, 16  ;;  %v599_v38 = vshll.u32 %v1421_v33, 16  ;;  %v1418_v39 = vld [vmem:[%s1790_s2 + $0x80] sm:$0xff]   ;;  %v720_v52 = vshll.u32 %v1127_v50, 16 }
  0x1c   : > { %1233 = vmatpush3.bf16.msra.mxu1 %v1391_v6  ;;  %1214 = vmatprep.subr.bf16.mxu0 %v1490_v1  ;;  %v592_v36 = vrot.slane %v590_v31, 1  ;;  %v1417_v37 = vld [vmem:[%s1790_s2 + $0xc8] sm:$0xff]   ;;  %v1419_v41 = vld [vmem:[%s1790_s2 + $0xc0] sm:$0xff]   ;;  %vm1717_vm3 = vmand %vm603_vm1, %vm604_vm2  ;;  %v718_v55 = vshrl.u32 %v1127_v50, 16 }
  0x1d   : > { %1234 = vmatprep.subr.bf16.mxu1 %v1490_v1  ;;  %v601_v42 = vrot.slane %v599_v38, 5  ;;  %v476_v44 = vld [vmem:[%s1628_s20 + $0x8] sm:$0xf]  ;;  %v1420_v45 = vld [vmem:[%s1790_s2 + $0x138] sm:$0xff]   ;;  %v1422_v47 = vld [vmem:[%s1790_s2 + $0x130] sm:$0xff]   ;;  %v722_v56 = vrot.slane %v720_v52, 1 }
  0x1e   : > { %v593_v40 = vor.u32 %v592_v36, %v588_v35  ;;  %v1423_v48 = vld [vmem:[%s1790_s2 + $0x128] sm:$0xff]   ;;  %v1424_v49 = vld [vmem:[%s1790_s2 + $0x120] sm:$0xff]   ;;  %v1425_v51 = vld [vmem:[%s1790_s2 + $0x118] sm:$0xff]  }
  0x1f   : > { %1215 = vmatpush3.bf16.msra.mxu0 %v1392_v7  ;;  %v1426_v53 = vld [vmem:[%s1790_s2 + $0x110] sm:$0xff]   ;;  %v1429_v54 = vld [vmem:[%s1653_s9 + $0x4] ss:$0 sps:$4 sm:$0x11]   ;;  %v1427_v57 = vld [vmem:[%s1790_s2 + $0x108] sm:$0xff]   ;;  %v723_v59 = vor.u32 %v722_v56, %v718_v55 }
  0x20   : > { %1235 = vmatpush3.bf16.msra.mxu1 %v1393_v8  ;;  %1216 = vmatprep.subr.bf16.mxu0 %v1490_v1  ;;  %v606_v46 = vsel %vm1717_vm3, %v593_v40, %v601_v42  ;;  %v729_v58 = vshll.u32 %v1429_v54, 16  ;;  %v1428_v60 = vld [vmem:[%s1790_s2 + $0x100] sm:$0xff]  }
  0x21   : > { %1236 = vmatprep.subr.bf16.mxu1 %v1490_v1 }
  0x22   : > { %v731_v61 = vrot.slane %v729_v58, 5 }
  0x23   : > { %1217 = vmatpush3.bf16.msra.mxu0 %v1394_v9 }
  0x24   : > { %1237 = vmatpush3.bf16.msra.mxu1 %v1395_v10  ;;  %1218 = vmatprep.subr.bf16.mxu0 %v1490_v1  ;;  %v733_v62 = vsel %vm1717_vm3, %v723_v59, %v731_v61 }
  0x25   : > { %1238 = vmatprep.subr.bf16.mxu1 %v1490_v1 }
  0x27   : > { %1219 = vmatpush3.bf16.msra.mxu0 %v1396_v11 }
  0x28   : > { %1239 = vmatpush3.bf16.msra.mxu1 %v1397_v12  ;;  %1220 = vmatprep.subr.bf16.mxu0 %v1490_v1 }
  0x29   : > { %1240 = vmatprep.subr.bf16.mxu1 %v1490_v1 }
  0x2b   : > { %1221 = vmatpush3.bf16.msra.mxu0 %v1398_v13 }
  0x2c   : > { %1241 = vmatpush3.bf16.msra.mxu1 %v1399_v14  ;;  %1222 = vmatprep.subr.bf16.mxu0 %v1490_v1 }
  0x2d   : > { %1242 = vmatprep.subr.bf16.mxu1 %v1490_v1 }
  0x2f   : > { %1223 = vmatpush3.bf16.msra.mxu0 %v1400_v15 }
  0x30   : > { %1243 = vmatpush3.bf16.msra.mxu1 %v1401_v16  ;;  %1248 = vmatprep.subr.bf16.mxu0 %v1490_v1 }
  0x31   : > { %1268 = vmatprep.subr.bf16.mxu1 %v1490_v1 }
  0x32   : > { %1225 = vmatmul.mubr.bf16.vlgmr.msra.gmra.mxu0 %v1639_v17 }
  0x33   : > { %1245 = vmatmul.mubr.bf16.vlgmr.msra.gmra.mxu1 %v265_v18  ;;  %1249 = vmatpush3.bf16.msra.mxu0 %v1404_v19  ;;  %v1153_v19 = vld [vmem:[%s1791_s3] ss:$0 sm:$0xff] }
  0x34   : > { %1269 = vmatpush3.bf16.msra.mxu1 %v1405_v20  ;;  %1250 = vmatprep.subr.bf16.mxu0 %v1490_v1 }
  0x35   : > { %1270 = vmatprep.subr.bf16.mxu1 %v1490_v1  ;;  %1264 = vmatprep.mubr.msk.bf16.mxu0 %vm1491_vm0, %v1490_v1 }
  0x36   : > { %1284 = vmatprep.mubr.msk.bf16.mxu1 %vm1491_vm0, %v1490_v1 }
  0x37   : > { %1251 = vmatpush3.bf16.msra.mxu0 %v1406_v21 }
  0x38   : > { %1271 = vmatpush3.bf16.msra.mxu1 %v1407_v22  ;;  %1252 = vmatprep.subr.bf16.mxu0 %v1490_v1 }
  0x39   : > { %1272 = vmatprep.subr.bf16.mxu1 %v1490_v1 }
  0x3b   : > { %1253 = vmatpush3.bf16.msra.mxu0 %v1408_v23 }
  0x3c   : > { %1273 = vmatpush3.bf16.msra.mxu1 %v1409_v24  ;;  %1254 = vmatprep.subr.bf16.mxu0 %v1490_v1 }
  0x3d   : > { %1274 = vmatprep.subr.bf16.mxu1 %v1490_v1 }
  0x3f   : > { %1255 = vmatpush3.bf16.msra.mxu0 %v1410_v25 }
  0x40   : > { %1275 = vmatpush3.bf16.msra.mxu1 %v1411_v26  ;;  %1256 = vmatprep.subr.bf16.mxu0 %v1490_v1 }
  0x41   : > { %1276 = vmatprep.subr.bf16.mxu1 %v1490_v1 }
  0x43   : > { %1257 = vmatpush3.bf16.msra.mxu0 %v1412_v27 }
  0x44   : > { %1277 = vmatpush3.bf16.msra.mxu1 %v1413_v29  ;;  %1258 = vmatprep.subr.bf16.mxu0 %v1490_v1 }
  0x45   : > { %1278 = vmatprep.subr.bf16.mxu1 %v1490_v1 }
  0x47   : > { %1259 = vmatpush3.bf16.msra.mxu0 %v1414_v30 }
  0x48   : > { %1279 = vmatpush3.bf16.msra.mxu1 %v1415_v32  ;;  %1260 = vmatprep.subr.bf16.mxu0 %v1490_v1 }
  0x49   : > { %1280 = vmatprep.subr.bf16.mxu1 %v1490_v1 }
  0x4b   : > { %1261 = vmatpush3.bf16.msra.mxu0 %v1416_v34 }
  0x4c   : > { %1281 = vmatpush3.bf16.msra.mxu1 %v1417_v37  ;;  %1262 = vmatprep.subr.bf16.mxu0 %v1490_v1 }
  0x4d   : > { %1282 = vmatprep.subr.bf16.mxu1 %v1490_v1 }
  0x4f   : > { %1263 = vmatpush3.bf16.msra.mxu0 %v1418_v39 }
  0x50   : > { %1283 = vmatpush3.bf16.msra.mxu1 %v1419_v41  ;;  %1288 = vmatprep.subr.bf16.mxu0 %v1490_v1 }
  0x52   : > { %1265 = vmatmul.mubr.bf16.vlgmr.msra.gmra.mxu0 %v476_v44 }
  0x53   : > { %1289 = vmatpush3.bf16.msra.mxu0 %v1420_v45  ;;  %1285 = vmatmul.mubr.bf16.vlgmr.msra.gmra.mxu1 %v606_v46 }
  0x54   : > { %1290 = vmatprep.subr.bf16.mxu0 %v1490_v1  ;;  %1304 = vmatprep.mubr.msk.bf16.mxu0 %vm1491_vm0, %v1490_v1 }
  0x57   : > { %1291 = vmatpush3.bf16.msra.mxu0 %v1422_v47 }
  0x58   : > { %1292 = vmatprep.subr.bf16.mxu0 %v1490_v1 }
  0x5b   : > { %1293 = vmatpush3.bf16.msra.mxu0 %v1423_v48 }
  0x5c   : > { %1294 = vmatprep.subr.bf16.mxu0 %v1490_v1 }
  0x5f   : > { %1295 = vmatpush3.bf16.msra.mxu0 %v1424_v49 }
  0x60   : > { %1296 = vmatprep.subr.bf16.mxu0 %v1490_v1 }
  0x63   : > { %1297 = vmatpush3.bf16.msra.mxu0 %v1425_v51 }
  0x64   : > { %1298 = vmatprep.subr.bf16.mxu0 %v1490_v1 }
  0x67   : > { %1299 = vmatpush3.bf16.msra.mxu0 %v1426_v53 }
  0x68   : > { %1300 = vmatprep.subr.bf16.mxu0 %v1490_v1 }
  0x6b   : > { %1301 = vmatpush3.bf16.msra.mxu0 %v1427_v57 }
  0x6c   : > { %1302 = vmatprep.subr.bf16.mxu0 %v1490_v1 }
  0x6f   : > { %1303 = vmatpush3.bf16.msra.mxu0 %v1428_v60 }
  0x72   : > { %1305 = vmatmul.mubr.bf16.vlgmr.msra.gmra.mxu0 %v733_v62 }
  0xf2   : > { %v382_v63 = vpop.f32.mrf.mxu0 }
  0xf3   : > { %v470_v0 = vpop.f32.mrf.mxu1 }
  0xf4   : > { %v1226_v2 = vpop.f32.mrf.mxu0  ;;  %v471_v15 = vadd.f32 %v470_v0, %v382_v63 }
  0xf5   : > { %v1246_v3 = vpop.f32.mrf.mxu1 }
  0xf6   : > { %v385_v4 = vpop.f32.mrf.mxu0 }
  0xf7   : > { %v473_v5 = vpop.f32.mrf.mxu1 }
  0xf8   : > { %v1227_v6 = vpop.f32.mrf.mxu0 }
  0xf9   : > { %v1247_v7 = vpop.f32.mrf.mxu1 }
 0x112   : > { %v576_v8 = vpop.f32.mrf.mxu0 }
 0x113   : > { %v706_v9 = vpop.f32.mrf.mxu1  ;;  %v582_v16 = vadd.f32 %v576_v8, %v471_v15 }
 0x114   : > { %v1266_v10 = vpop.f32.mrf.mxu0 }
 0x115   : > { %v1286_v11 = vpop.f32.mrf.mxu1  ;;  %v712_v17 = vadd.f32 %v706_v9, %v582_v16 }
 0x116   : > { %v579_v12 = vpop.f32.mrf.mxu0 }
 0x117   : > { %v709_v1 = vpop.f32.mrf.mxu1 }
 0x118   : > { %v1267_v13 = vpop.f32.mrf.mxu0 }
 0x119   : > { %v1287_v14 = vpop.f32.mrf.mxu1 }
 0x132   : > { %v833_v18 = vpop.f32.mrf.mxu0 }
 0x133   : > { %v839_v20 = vadd.f32 %v833_v18, %v712_v17 }
 0x134   : > { %v1306_v21 = vpop.f32.mrf.mxu0 }
 0x135   : > { %v847_v22 = vadd.f32 %v1153_v19, %v839_v20 }
 0x136   : > { %v836_v23 = vpop.f32.mrf.mxu0 }
 0x137   : > { %v848_v24 = vmul.f32 0.1, %v847_v22 }
 0x138   : > { %v1307_v25 = vpop.f32.mrf.mxu0 }
 0x139   : > { %v849_v26 = vmax.f32 %v847_v22, %v848_v24  ;;  %870 = sbr.rel (!%p1549_p3) target bundleno = 326 (0x146), region = 40 }
 0x13b   : > { %v850_v27 = vpack.c.bf16 %v849_v26, %v849_v26 }
 0x13d   : > { %1154 = vst.sshfl [vmem:[%s240_s6] sm:$0x3 pattern:$0x76325410] %v850_v27 }
 0x13e LB: >> { %s890_s15 = sadd.s32 1, %s1488_s15   ;;  %s1488_s15 = sphi %s1486_s15, %s890_s15  }
 0x13f   : >> { %p889_p9 = scmp.ge.s32.totalorder %s890_s15, 1 }
 0x141   : > { %892 = sbr.rel (!%p889_p9) target bundleno = 318 (0x13e), region = 107 }
 0x144   : >> { %v896_v28 = vld [vmem:[%s240_s6] sm:$0x3] }
 0x145   : >> { %897 = vst [vmem:[%s877_s11] sm:$0x3] %v896_v28 }
 0x146 PF: > { %s14_s19 = sadd.s32 1, %s1484_s19   ;;  %s1796_s15 = smov %s1472_s16 }
 0x147   : > { %p11_p10 = scmp.ge.s32.totalorder %s14_s19, 10   ;;  %s1797_s16 = smov %s1558_s25 }
 0x148   : > { %s1798_s17 = smov %s1480_s18  ;;  %s1799_s18 = smov %s1801_s21 }
 0x149   :  { %13 = sbr.rel (!%p11_p10) target bundleno = 3 (0x3), region = 118 }

// kernel: _forward.7
= control target key start
LH: loop header
LB: loop body
LE: loop exit
PB: predicated region body
PF: predicated region fallthrough
CT: control target
= control target key end

     0   :  { %s1156_s15 = smov 0   ;;  %s1158_s16 = smov 0   ;;  %s1342_s0 = inlined_call_operand.vmem [shape: bf16[8,16,128], index: 0, kind: input, shape index: {}, may-alias: {0,1}]   ;;  %s1343_s1 = inlined_call_operand.vmem [shape: bf16[8,16,128], index: 1, kind: input, shape index: {}, may-alias: {0,1}]   ;;  %s1344_s2 = inlined_call_operand.vmem [shape: bf16[3,128,128], index: 2, kind: input, shape index: {}]   ;;  %s1345_s3 = inlined_call_operand.vmem [shape: f32[1,128], index: 3, kind: input, shape index: {}]   ;;  %s1346_s4 = inlined_call_operand.vmem [shape: bf16[8,4,128], index: 4, kind: output, shape index: {}]  }
   0x1   :  { %s1160_s17 = smov 0   ;;  %s1162_s18 = smov 0  }
   0x2   :  { %s1164_s19 = smov 0  }
   0x3 LB: > { %s799_s20 = sadd.s32 4294967295, %s1123_s19   ;;  %s26_s21 = sadd.s32 1, %s1119_s18  ;;  %s1123_s19 = sphi %s1164_s19, %s14_s19   ;;  %s1119_s18 = sphi %s1162_s18, %s1351_s18   ;;  %s1115_s17 = sphi %s1160_s17, %s1350_s17   ;;  %s1111_s16 = sphi %s1158_s16, %s1349_s16   ;;  %s1107_s15 = sphi %s1156_s15, %s1348_s15  }
   0x4   : > { %p28_p0 = scmp.ge.s32.totalorder %s26_s21, 8  ;;  %s135_s22 = sadd.s32 1, %s1111_s16 }
   0x5   : > { %p145_p1 = scmp.ne.s32.totalorder %s1111_s16, %s1107_s15  ;;  %p146_p2 = scmp.eq.s32.totalorder %s799_s20, 7 }
   0x6   : > { %s1353_s21 = smov (%p28_p0, %s26_s21), 0  ;;  %p803_p4 = scmp.ge.s32.totalorder %s1123_s19, 1 }
   0x7   : > { %p1188_p3 = por %p146_p2, %p145_p1  ;;  %s130_s24 = ssub.s32 %s1119_s18, %s1353_s21 }
   0x8   : > { %p200_p5 = scmp.lt.s32.totalorder %s1123_s19, 9  ;;  %p133_p6 = scmp.eq.s32.totalorder %s130_s24, 0 }
   0xa   : > { %p201_p7 = pnand %p803_p4, %p200_p5 }
   0xb   : > { %s1197_s25 = scalar_select %p133_p6, %s1111_s16, %s135_s22  }
   0xc   : > { %204 = sbr.rel (%p201_p7) target bundleno = 290 (0x122), region = 36  ;;  %p237_p8 = scmp.lt.s32.totalorder (!%p201_p7), %s1115_s17, 7 }
  0x11   : > { %v1042_v0 = vld [vmem:[%s1344_s2 + $0x78] sm:$0xff]   ;;  %v1129_v1 = vmov 0.0   ;;  %v1044_v3 = vld [vmem:[%s1344_s2 + $0x70] sm:$0xff]   ;;  %vm1130_vm0 = vmmov 0   ;;  %v1046_v5 = vld [vmem:[%s1344_s2 + $0x68] sm:$0xff]   ;;  %s238_s10 = scalar_select %p237_p8, %s1115_s17, 7 }
  0x12   : > { %907 = vmatprep.subr.bf16.mxu0 %v1129_v1  ;;  %927 = vmatprep.subr.bf16.mxu1 %v1129_v1  ;;  %v1043_v2 = vld [vmem:[%s1344_s2 + $0x38] sm:$0xff]   ;;  %v1045_v4 = vld [vmem:[%s1344_s2 + $0x30] sm:$0xff]   ;;  %v1047_v6 = vld [vmem:[%s1344_s2 + $0x28] sm:$0xff]   ;;  %vm296_vm1 = vcmask 1043456   ;;  %vm297_vm2 = vsmask.f32 3328 }
  0x13   : > { %908 = vmatpush3.bf16.msra.mxu0 %v1042_v0  ;;  %923 = vmatprep.mubr.msk.bf16.mxu0 %vm1130_vm0, %v1129_v1  ;;  %v1048_v7 = vld [vmem:[%s1344_s2 + $0x60] sm:$0xff]   ;;  %s876_s20 = sshll.u32 %s238_s10, 3  ;;  %v1050_v9 = vld [vmem:[%s1344_s2 + $0x58] sm:$0xff]   ;;  %v1052_v14 = vld [vmem:[%s1344_s2 + $0x50] sm:$0xff]   ;;  %vm499_vm4 = vcmask 1042432   ;;  %s1125_s12 = smov (%p1188_p3), 0  }
  0x14   : > { %928 = vmatpush3.bf16.msra.mxu1 %v1043_v2  ;;  %909 = vmatprep.subr.bf16.mxu0 %v1129_v1  ;;  %v1049_v8 = vld [vmem:[%s1344_s2 + $0x20] sm:$0xff]   ;;  %s878_s26 = sadd.s32 4, %s876_s20  ;;  %s1240_s29 = scalar_lea.vmem %s1342_s0, %s876_s20  ;;  %v1051_v10 = vld [vmem:[%s1344_s2 + $0x18] sm:$0xff]   ;;  %v1053_v15 = vld [vmem:[%s1344_s2 + $0x10] sm:$0xff]  }
  0x15   : > { %929 = vmatprep.subr.bf16.mxu1 %v1129_v1  ;;  %943 = vmatprep.mubr.msk.bf16.mxu1 %vm1130_vm0, %v1129_v1  ;;  %s253_s8 = scalar_lea.vmem %s1343_s1, %s878_s26  ;;  %v259_v11 = vld [vmem:[%s1240_s29] sm:$0xf]  ;;  %v1054_v17 = vld [vmem:[%s1344_s2 + $0x48] sm:$0xff]   ;;  %vm298_vm3 = vmand %vm296_vm1, %vm297_vm2 }
  0x16   : > { %v809_v12 = vcombine.low %v259_v11, %v259_v11  ;;  %v1254_v13 = vld [vmem:[%s253_s8] ss:$0 sps:$4 sm:$0x11]   ;;  %v1055_v21 = vld [vmem:[%s1344_s2 + $0x8] sm:$0xff]   ;;  %v1060_v27 = vld [vmem:[%s1344_s2 + $0xb8] sm:$0xff]  }
  0x17   : > { %910 = vmatpush3.bf16.msra.mxu0 %v1044_v3  ;;  %v292_v20 = vshll.u32 %v1254_v13, 16  ;;  %v1056_v22 = vld [vmem:[%s1344_s2 + $0x40] sm:$0xff]   ;;  %v1061_v28 = vld [vmem:[%s1344_s2 + $0xb0] sm:$0xff]   ;;  %v1062_v29 = vld [vmem:[%s1344_s2 + $0xa8] sm:$0xff]   ;;  %v498_v37 = vrot.slane %v1254_v13, 5 }
  0x18   : > { %930 = vmatpush3.bf16.msra.mxu1 %v1045_v4  ;;  %911 = vmatprep.subr.bf16.mxu0 %v1129_v1  ;;  %v283_v16 = vshll.u32 %v809_v12, 16  ;;  %v281_v18 = vshrl.u32 %v809_v12, 16  ;;  %v1057_v25 = vld [vmem:[%s1344_s2] sm:$0xff]   ;;  %v1064_v31 = vld [vmem:[%s1344_s2 + $0x98] sm:$0xff]   ;;  %v1065_v32 = vld [vmem:[%s1344_s2 + $0x90] sm:$0xff]  }
  0x19   : > { %931 = vmatprep.subr.bf16.mxu1 %v1129_v1  ;;  %v294_v24 = vrot.slane %v292_v20, 5  ;;  %v1063_v30 = vld [vmem:[%s1344_s2 + $0xa0] sm:$0xff]   ;;  %v1066_v33 = vld [vmem:[%s1344_s2 + $0x88] sm:$0xff]  }
  0x1a   : > { %v285_v19 = vrot.slane %v283_v16, 1  ;;  %v1068_v34 = vld [vmem:[%s1240_s29] ss:$0 sps:$4 sm:$0xee]   ;;  %s234_s29 = sand.u32 1, %s1107_s15   ;;  %s871_s15 = sshll.u32 (%p1188_p3), %s1115_s17, 1 }
  0x1b   : > { %912 = vmatpush3.bf16.msra.mxu0 %v1046_v5  ;;  %v1067_v35 = vld [vmem:[%s1344_s2 + $0x80] sm:$0xff]   ;;  %v497_v36 = vrot.slane %v1068_v34, 1  ;;  %s804_s7 = sshll.u32 %s234_s29, 2  ;;  %s645_s11 = scalar_lea.vmem (%p1188_p3), %s1346_s4, %s871_s15  }
  0x1c   : > { %932 = vmatpush3.bf16.msra.mxu1 %v1047_v6  ;;  %913 = vmatprep.subr.bf16.mxu0 %v1129_v1  ;;  %v286_v23 = vor.u32 %v285_v19, %v281_v18  ;;  %v868_v49 = vld [vmem:[%s1345_s3] ss:$0 sm:$0xff]  ;;  %s236_s8 = scalar_lea.vmem [#allocation2], %s804_s7  }
  0x1d   : > { %933 = vmatprep.subr.bf16.mxu1 %v1129_v1  ;;  %v502_v38 = vsel %vm499_vm4, %v497_v36, %v498_v37 }
  0x1e   : > { %v299_v26 = vsel %vm298_vm3, %v286_v23, %v294_v24 }
  0x1f   : > { %914 = vmatpush3.bf16.msra.mxu0 %v1048_v7 }
  0x20   : > { %934 = vmatpush3.bf16.msra.mxu1 %v1049_v8  ;;  %915 = vmatprep.subr.bf16.mxu0 %v1129_v1 }
  0x21   : > { %935 = vmatprep.subr.bf16.mxu1 %v1129_v1 }
  0x23   : > { %916 = vmatpush3.bf16.msra.mxu0 %v1050_v9 }
  0x24   : > { %936 = vmatpush3.bf16.msra.mxu1 %v1051_v10  ;;  %917 = vmatprep.subr.bf16.mxu0 %v1129_v1 }
  0x25   : > { %937 = vmatprep.subr.bf16.mxu1 %v1129_v1 }
  0x27   : > { %918 = vmatpush3.bf16.msra.mxu0 %v1052_v14 }
  0x28   : > { %938 = vmatpush3.bf16.msra.mxu1 %v1053_v15  ;;  %919 = vmatprep.subr.bf16.mxu0 %v1129_v1 }
  0x29   : > { %939 = vmatprep.subr.bf16.mxu1 %v1129_v1 }
  0x2b   : > { %920 = vmatpush3.bf16.msra.mxu0 %v1054_v17 }
  0x2c   : > { %940 = vmatpush3.bf16.msra.mxu1 %v1055_v21  ;;  %921 = vmatprep.subr.bf16.mxu0 %v1129_v1 }
  0x2d   : > { %941 = vmatprep.subr.bf16.mxu1 %v1129_v1 }
  0x2f   : > { %922 = vmatpush3.bf16.msra.mxu0 %v1056_v22 }
  0x30   : > { %942 = vmatpush3.bf16.msra.mxu1 %v1057_v25  ;;  %947 = vmatprep.subr.bf16.mxu0 %v1129_v1 }
  0x32   : > { %924 = vmatmul.mubr.bf16.vlgmr.msra.gmra.mxu0 %v299_v26 }
  0x33   : > { %944 = vmatmul.mubr.bf16.vlgmr.msra.gmra.mxu1 %v259_v11  ;;  %948 = vmatpush3.bf16.msra.mxu0 %v1060_v27 }
  0x34   : > { %949 = vmatprep.subr.bf16.mxu0 %v1129_v1  ;;  %963 = vmatprep.mubr.msk.bf16.mxu0 %vm1130_vm0, %v1129_v1 }
  0x37   : > { %950 = vmatpush3.bf16.msra.mxu0 %v1061_v28 }
  0x38   : > { %951 = vmatprep.subr.bf16.mxu0 %v1129_v1 }
  0x3b   : > { %952 = vmatpush3.bf16.msra.mxu0 %v1062_v29 }
  0x3c   : > { %953 = vmatprep.subr.bf16.mxu0 %v1129_v1 }
  0x3f   : > { %954 = vmatpush3.bf16.msra.mxu0 %v1063_v30 }
  0x40   : > { %955 = vmatprep.subr.bf16.mxu0 %v1129_v1 }
  0x43   : > { %956 = vmatpush3.bf16.msra.mxu0 %v1064_v31 }
  0x44   : > { %957 = vmatprep.subr.bf16.mxu0 %v1129_v1 }
  0x47   : > { %958 = vmatpush3.bf16.msra.mxu0 %v1065_v32 }
  0x48   : > { %959 = vmatprep.subr.bf16.mxu0 %v1129_v1 }
  0x4b   : > { %960 = vmatpush3.bf16.msra.mxu0 %v1066_v33 }
  0x4c   : > { %961 = vmatprep.subr.bf16.mxu0 %v1129_v1 }
  0x4f   : > { %962 = vmatpush3.bf16.msra.mxu0 %v1067_v35 }
  0x52   : > { %964 = vmatmul.mubr.bf16.vlgmr.msra.gmra.mxu0 %v502_v38 }
  0xf2   : > { %v399_v39 = vpop.f32.mrf.mxu0 }
  0xf3   : > { %v487_v40 = vpop.f32.mrf.mxu1 }
  0xf4   : > { %v925_v41 = vpop.f32.mrf.mxu0  ;;  %v488_v47 = vadd.f32 %v487_v40, %v399_v39 }
  0xf5   : > { %v945_v42 = vpop.f32.mrf.mxu1 }
  0xf6   : > { %v402_v43 = vpop.f32.mrf.mxu0 }
  0xf7   : > { %v490_v44 = vpop.f32.mrf.mxu1 }
  0xf8   : > { %v926_v45 = vpop.f32.mrf.mxu0 }
  0xf9   : > { %v946_v46 = vpop.f32.mrf.mxu1 }
 0x112   : > { %v603_v48 = vpop.f32.mrf.mxu0 }
 0x113   : > { %v609_v50 = vadd.f32 %v603_v48, %v488_v47 }
 0x114   : > { %v965_v51 = vpop.f32.mrf.mxu0 }
 0x115   : > { %v617_v52 = vadd.f32 %v868_v49, %v609_v50  ;;  %638 = sbr.rel (!%p1188_p3) target bundleno = 290 (0x122), region = 40 }
 0x116   : > { %v606_v53 = vpop.f32.mrf.mxu0 }
 0x117   : > { %v618_v54 = vpack.c.bf16 %v617_v52, %v617_v52 }
 0x118   : > { %v966_v55 = vpop.f32.mrf.mxu0 }
 0x119   : > { %869 = vst.sshfl [vmem:[%s236_s8] sm:$0x3 pattern:$0x76325410] %v618_v54 }
 0x11a LB: >> { %s658_s12 = sadd.s32 1, %s1127_s12   ;;  %s1127_s12 = sphi %s1125_s12, %s658_s12  }
 0x11b   : >> { %p657_p9 = scmp.ge.s32.totalorder %s658_s12, 1 }
 0x11d   : > { %660 = sbr.rel (!%p657_p9) target bundleno = 282 (0x11a), region = 105 }
 0x120   : >> { %v664_v56 = vld [vmem:[%s236_s8] sm:$0x3] }
 0x121   : >> { %665 = vst [vmem:[%s645_s11] sm:$0x3] %v664_v56 }
 0x122 PF: > { %s14_s19 = sadd.s32 1, %s1123_s19   ;;  %s1348_s15 = smov %s1111_s16 }
 0x123   : > { %p11_p10 = scmp.ge.s32.totalorder %s14_s19, 10   ;;  %s1349_s16 = smov %s1197_s25 }
 0x124   : > { %s1350_s17 = smov %s1119_s18  ;;  %s1351_s18 = smov %s1353_s21 }
 0x125   :  { %13 = sbr.rel (!%p11_p10) target bundleno = 3 (0x3), region = 116 }

</bundles_post_ra>
